<compile_context>
chip_gen: v6e
topology: v6e:2x2x1
jax: 0.10.0
libtpu: 0.0.40
codegen_flags: <defaults>
</compile_context>

<pallas_src>
import functools

import jax
import jax.numpy as jnp
from jax.experimental import pallas as pl
from jax.experimental.pallas import tpu as pltpu


LANE = 128


def _round_up(n, m):
    return ((n + m - 1) // m) * m


def _pad2(a, rows, cols):
    return jnp.pad(a, ((0, rows - a.shape[0]), (0, cols - a.shape[1])))


def _probe_pipeline_mode():
    """Detect pl.Buffered/pipeline_mode support without tracing a kernel."""
    try:
        pl.BlockSpec((8, 128), lambda i: (0, 0), pipeline_mode=pl.Buffered(1))
        return True
    except Exception:
        return False


_PIPELINE_MODE_OK = _probe_pipeline_mode()


def _vmem_capacity_bytes():
    try:
        return int(pltpu.get_tpu_info().vmem_capacity_bytes)
    except Exception:
        return 64 << 20  # conservative: v7x per-TensorCore VMEM


# ----------------------------------------------------------------------------
# Kernel
# ----------------------------------------------------------------------------
def mlp_kernel(x_ref,
               w1_ref, b1_ref,
               w2_ref, b2_ref,
               w3_ref, b3_ref,
               w4_ref, b4_ref,
               w5_ref, b5_ref,
               o_ref):
    """Fused relu(relu(relu(relu(x@W1+b1)@W2+b2)@W3+b3)@W4+b4)@W5+b5."""
    compute_dtype = w1_ref.dtype  # bf16 MXU inputs, f32 accumulation

    def dense(h, w_ref, b_ref, relu):
        y = jnp.dot(h, w_ref[...], preferred_element_type=jnp.float32)
        y = y + b_ref[...]                       # f32 bias add (VPU)
        return jnp.maximum(y, 0.0) if relu else y

    h = x_ref[...]                               # already bf16 from the wrapper
    h = dense(h, w1_ref, b1_ref, True).astype(compute_dtype)
    h = dense(h, w2_ref, b2_ref, True).astype(compute_dtype)
    h = dense(h, w3_ref, b3_ref, True).astype(compute_dtype)
    h = dense(h, w4_ref, b4_ref, True).astype(compute_dtype)
    o_ref[...] = dense(h, w5_ref, b5_ref, False).astype(o_ref.dtype)


# ----------------------------------------------------------------------------
# One-time parameter preparation (hoisted out of the per-call path)
# ----------------------------------------------------------------------------
def prepare_params(params, compute_dtype=jnp.bfloat16):
    """Pad feature dims to multiples of 128 and cast weights to compute_dtype.

    params: list of (W, b) with W shaped (in, out), b shaped (out,) or (1, out).
    Returns a dict consumed by custom_model_forward.  Zero padding is exact:
    padded bias columns are 0 and ReLU preserves 0.
    """
    dims = [params[0][0].shape[0]] + [w.shape[1] for (w, _) in params]
    pdims = [_round_up(d, LANE) for d in dims]
    pw, pb = [], []
    for li, (w, b) in enumerate(params):
        w32 = jnp.asarray(w, jnp.float32)
        b32 = jnp.asarray(b, jnp.float32).reshape(1, -1)
        pw.append(_pad2(w32, pdims[li], pdims[li + 1]).astype(compute_dtype))
        pb.append(_pad2(b32, 1, pdims[li + 1]))   # biases stay f32
    return {
        "weights": tuple(jax.device_put(w) for w in pw),
        "biases": tuple(jax.device_put(b) for b in pb),
        "dims": tuple(dims),
        "pdims": tuple(pdims),
    }


# ----------------------------------------------------------------------------
# Forward
# ----------------------------------------------------------------------------
def custom_model_forward(x, prepared, *, block_b=None):
    """x: (B, input_size) f32.  prepared: output of prepare_params()."""
    B, in_size = x.shape
    dims, pdims = prepared["dims"], prepared["pdims"]
    assert in_size == dims[0], (in_size, dims[0])
    out_size = dims[-1]
    in_pad, out_pad = pdims[0], pdims[-1]
    pw, pb = prepared["weights"], prepared["biases"]
    compute_dtype = pw[0].dtype

    # ---- batch tiling -------------------------------------------------------
    vmem_cap = _vmem_capacity_bytes()
    if block_b is None:
        # bigger M tile where VMEM allows (v5e/v6e: 128 MiB); 256 elsewhere.
        block_b = 512 if vmem_cap >= (100 << 20) else 256
    # keep >= 2 grid steps so the "parallel" axis can shard across both v7x
    # TensorCores, and keep block_b a multiple of 8 (sublane).
    block_b = max(8, min(block_b, _round_up(-(-B // 2), 8)))
    B_pad = _round_up(B, block_b)            # exact blocks -> lane-dense stores
    grid = (B_pad // block_b,)

    # ---- pad + cast x once (bf16 halves x DMA and pipeline-buffer VMEM) -----
    x_p = _pad2(jnp.asarray(x, jnp.float32), B_pad, in_pad).astype(compute_dtype)

    # ---- BlockSpecs ---------------------------------------------------------
    def const_map(i):                        # weights/biases: same block always
        return (0, 0)

    w_spec_kwargs = {}
    nbuf_w = 2
    if _PIPELINE_MODE_OK:
        w_spec_kwargs["pipeline_mode"] = pl.Buffered(1)   # single VMEM copy
        nbuf_w = 1

    in_specs = [pl.BlockSpec((block_b, in_pad), lambda i: (i, 0))]
    flat_args = [x_p]
    for w_p, b_p in zip(pw, pb):
        in_specs.append(pl.BlockSpec(w_p.shape, const_map, **w_spec_kwargs))
        in_specs.append(pl.BlockSpec(b_p.shape, const_map, **w_spec_kwargs))
        flat_args += [w_p, b_p]
    out_spec = pl.BlockSpec((block_b, out_pad), lambda i: (i, 0))

    # ---- VMEM budget & cost estimate ----------------------------------------
    weight_bytes = sum(int(w.size) * w.dtype.itemsize for w in pw)
    bias_bytes = sum(int(b.size) * 4 for b in pb)
    x_buf_bytes = 2 * block_b * in_pad * x_p.dtype.itemsize       # double-buffered
    o_buf_bytes = 2 * block_b * out_pad * 4
    act_bytes = 3 * block_b * max(pdims) * 4                      # live intermediates
    vmem_limit = (nbuf_w * (weight_bytes + bias_bytes)
                  + x_buf_bytes + o_buf_bytes + act_bytes + (2 << 20))
    vmem_cap_headroom = max(vmem_cap - (8 << 20), 16 << 20)       # leave scratch room
    vmem_limit = int(min(max(vmem_limit, 32 << 20), vmem_cap_headroom))

    flops = 2 * B_pad * sum(a * b for a, b in zip(pdims[:-1], pdims[1:]))
    bytes_accessed = (int(x_p.size) * x_p.dtype.itemsize
                      + weight_bytes + bias_bytes + B_pad * out_pad * 4)
    cost = pl.CostEstimate(flops=flops, transcendentals=0,
                           bytes_accessed=bytes_accessed)

    out_padded = pl.pallas_call(
        mlp_kernel,
        out_shape=jax.ShapeDtypeStruct((B_pad, out_pad), jnp.float32),
        grid_spec=pltpu.PrefetchScalarGridSpec(
            num_scalar_prefetch=0,
            grid=grid,
            in_specs=in_specs,
            out_specs=out_spec,
        ),
        compiler_params=pltpu.CompilerParams(
            dimension_semantics=("parallel",),
            vmem_limit_bytes=vmem_limit),
        cost_estimate=cost,
    )(*flat_args)

    # Lane-dense padded output computed in-kernel; slice back to the true shape.
    return out_padded[:B, :out_size].astype(x.dtype)


# ----------------------------------------------------------------------------
# Init + reference
# ----------------------------------------------------------------------------
def init_params(key, layer_sizes):
    """Deterministic init mimicking nn.Linear's uniform(-1/sqrt(fan_in), ...)."""
    params = []
    for d_in, d_out in zip(layer_sizes[:-1], layer_sizes[1:]):
        key, kw, kb = jax.random.split(key, 3)
        bound = 1.0 / jnp.sqrt(jnp.float32(d_in))
        w = jax.random.uniform(kw, (d_in, d_out), jnp.float32, -bound, bound)
        b = jax.random.uniform(kb, (1, d_out), jnp.float32, -bound, bound)
        params.append((w, b))
    return params


def reference_forward(x, params, compute_dtype=jnp.bfloat16):
    """Pure-JAX reference mirroring the kernel's bf16-in / f32-accum precision."""
    h = x
    last = len(params) - 1
    for i, (w, b) in enumerate(params):
        y = jnp.dot(h.astype(compute_dtype), w.astype(compute_dtype),
                    preferred_element_type=jnp.float32) + b
        h = jnp.maximum(y, 0.0) if i < last else y
    return h


if __name__ == "__main__":
    # Small shapes consistent with the module: input -> [h1,h2,h3,h4] -> 1
    batch = 256
    input_size = 64
    hidden_units = [256, 128, 64, 32]    # scaled-down analogue of [3000,1500,500,100]
    output_size = 1
    layer_sizes = [input_size] + hidden_units + [output_size]

    key = jax.random.PRNGKey(0)
    key, kx = jax.random.split(key)
    x = jax.random.normal(kx, (batch, input_size), jnp.float32)
    params = init_params(key, layer_sizes)

    # One-time padding + bf16 cast of the weights (hoisted out of the fwd path).
    prepared = prepare_params(params)
    prepared = jax.tree_util.tree_map(
        lambda a: jax.block_until_ready(a) if isinstance(a, jax.Array) else a,
        prepared)

    # block_b auto-clamps to 128 here -> grid of 2 parallel steps.
    out = custom_model_forward(x, prepared)
    out = jax.block_until_ready(out)

    ref = reference_forward(x, params)
    assert out.shape == (batch, output_size), out.shape
    assert jnp.allclose(out, ref, atol=3e-2, rtol=3e-2), \
        f"max abs err {float(jnp.max(jnp.abs(out - ref)))}"

    print("KERNEL_OK")
</pallas_src>

<mosaic_0001>
module attributes {stable_mosaic.version = 11 : i64} {
  func.func @mlp_kernel(%arg0: i32, %arg1: memref<128x128xbf16, #tpu.memory_space<vmem>>, %arg2: memref<128x256xbf16, #tpu.memory_space<vmem>>, %arg3: memref<1x256xf32, #tpu.memory_space<vmem>>, %arg4: memref<256x128xbf16, #tpu.memory_space<vmem>>, %arg5: memref<1x128xf32, #tpu.memory_space<vmem>>, %arg6: memref<128x128xbf16, #tpu.memory_space<vmem>>, %arg7: memref<1x128xf32, #tpu.memory_space<vmem>>, %arg8: memref<128x128xbf16, #tpu.memory_space<vmem>>, %arg9: memref<1x128xf32, #tpu.memory_space<vmem>>, %arg10: memref<128x128xbf16, #tpu.memory_space<vmem>>, %arg11: memref<1x128xf32, #tpu.memory_space<vmem>>, %arg12: memref<128x128xf32, #tpu.memory_space<vmem>>) attributes {dimension_semantics = [#tpu.dimension_semantics<parallel>], iteration_bounds = array<i64: 2>, scalar_prefetch = 0 : i64, scratch_operands = 0 : i64, tpu.core_type = #tpu.core_type<tc>, window_params = [{transform_indices = @transform_0, window_bounds = array<i64: 128, 128>}, {pipeline_mode = #tpu.pipeline_mode<synchronous>, transform_indices = @transform_1, window_bounds = array<i64: 128, 256>}, {pipeline_mode = #tpu.pipeline_mode<synchronous>, transform_indices = @transform_2, window_bounds = array<i64: 1, 256>}, {pipeline_mode = #tpu.pipeline_mode<synchronous>, transform_indices = @transform_3, window_bounds = array<i64: 256, 128>}, {pipeline_mode = #tpu.pipeline_mode<synchronous>, transform_indices = @transform_4, window_bounds = array<i64: 1, 128>}, {pipeline_mode = #tpu.pipeline_mode<synchronous>, transform_indices = @transform_5, window_bounds = array<i64: 128, 128>}, {pipeline_mode = #tpu.pipeline_mode<synchronous>, transform_indices = @transform_6, window_bounds = array<i64: 1, 128>}, {pipeline_mode = #tpu.pipeline_mode<synchronous>, transform_indices = @transform_7, window_bounds = array<i64: 128, 128>}, {pipeline_mode = #tpu.pipeline_mode<synchronous>, transform_indices = @transform_8, window_bounds = array<i64: 1, 128>}, {pipeline_mode = #tpu.pipeline_mode<synchronous>, transform_indices = @transform_9, window_bounds = array<i64: 128, 128>}, {pipeline_mode = #tpu.pipeline_mode<synchronous>, transform_indices = @transform_10, window_bounds = array<i64: 1, 128>}, {transform_indices = @transform_11, window_bounds = array<i64: 128, 128>}]} {
    %c0 = arith.constant 0 : index
    %c0_0 = arith.constant 0 : index
    %0 = vector.load %arg1[%c0, %c0_0] : memref<128x128xbf16, #tpu.memory_space<vmem>>, vector<128x128xbf16>
    %c0_1 = arith.constant 0 : index
    %c0_2 = arith.constant 0 : index
    %1 = vector.load %arg2[%c0_1, %c0_2] : memref<128x256xbf16, #tpu.memory_space<vmem>>, vector<128x256xbf16>
    %cst = arith.constant dense<0.000000e+00> : vector<128x256xf32>
    %2 = tpu.matmul %0, %1, %cst {dimension_numbers = #tpu.dot_dimension_numbers<[1], [0], [0], [1], [0, 0, 1, 1], [], []>} : vector<128x128xbf16>, vector<128x256xbf16>, vector<128x256xf32> -> vector<128x256xf32>
    %c0_3 = arith.constant 0 : index
    %c0_4 = arith.constant 0 : index
    %3 = vector.load %arg3[%c0_3, %c0_4] : memref<1x256xf32, #tpu.memory_space<vmem>>, vector<1x256xf32>
    %4 = vector.broadcast %3 : vector<1x256xf32> to vector<128x256xf32>
    %5 = arith.addf %2, %4 : vector<128x256xf32>
    %cst_5 = arith.constant 0.000000e+00 : f32
    %6 = vector.broadcast %cst_5 : f32 to vector<128x256xf32>
    %7 = arith.maximumf %5, %6 : vector<128x256xf32>
    %8 = arith.truncf %7 : vector<128x256xf32> to vector<128x256xbf16>
    %c0_6 = arith.constant 0 : index
    %c0_7 = arith.constant 0 : index
    %9 = vector.load %arg4[%c0_6, %c0_7] : memref<256x128xbf16, #tpu.memory_space<vmem>>, vector<256x128xbf16>
    %cst_8 = arith.constant dense<0.000000e+00> : vector<128x128xf32>
    %10 = tpu.matmul %8, %9, %cst_8 {dimension_numbers = #tpu.dot_dimension_numbers<[1], [0], [0], [1], [0, 0, 1, 1], [], []>} : vector<128x256xbf16>, vector<256x128xbf16>, vector<128x128xf32> -> vector<128x128xf32>
    %c0_9 = arith.constant 0 : index
    %c0_10 = arith.constant 0 : index
    %11 = vector.load %arg5[%c0_9, %c0_10] : memref<1x128xf32, #tpu.memory_space<vmem>>, vector<1x128xf32>
    %12 = vector.broadcast %11 : vector<1x128xf32> to vector<128x128xf32>
    %13 = arith.addf %10, %12 : vector<128x128xf32>
    %cst_11 = arith.constant 0.000000e+00 : f32
    %14 = vector.broadcast %cst_11 : f32 to vector<128x128xf32>
    %15 = arith.maximumf %13, %14 : vector<128x128xf32>
    %16 = arith.truncf %15 : vector<128x128xf32> to vector<128x128xbf16>
    %c0_12 = arith.constant 0 : index
    %c0_13 = arith.constant 0 : index
    %17 = vector.load %arg6[%c0_12, %c0_13] : memref<128x128xbf16, #tpu.memory_space<vmem>>, vector<128x128xbf16>
    %cst_14 = arith.constant dense<0.000000e+00> : vector<128x128xf32>
    %18 = tpu.matmul %16, %17, %cst_14 {dimension_numbers = #tpu.dot_dimension_numbers<[1], [0], [0], [1], [0, 0, 1, 1], [], []>} : vector<128x128xbf16>, vector<128x128xbf16>, vector<128x128xf32> -> vector<128x128xf32>
    %c0_15 = arith.constant 0 : index
    %c0_16 = arith.constant 0 : index
    %19 = vector.load %arg7[%c0_15, %c0_16] : memref<1x128xf32, #tpu.memory_space<vmem>>, vector<1x128xf32>
    %20 = vector.broadcast %19 : vector<1x128xf32> to vector<128x128xf32>
    %21 = arith.addf %18, %20 : vector<128x128xf32>
    %cst_17 = arith.constant 0.000000e+00 : f32
    %22 = vector.broadcast %cst_17 : f32 to vector<128x128xf32>
    %23 = arith.maximumf %21, %22 : vector<128x128xf32>
    %24 = arith.truncf %23 : vector<128x128xf32> to vector<128x128xbf16>
    %c0_18 = arith.constant 0 : index
    %c0_19 = arith.constant 0 : index
    %25 = vector.load %arg8[%c0_18, %c0_19] : memref<128x128xbf16, #tpu.memory_space<vmem>>, vector<128x128xbf16>
    %cst_20 = arith.constant dense<0.000000e+00> : vector<128x128xf32>
    %26 = tpu.matmul %24, %25, %cst_20 {dimension_numbers = #tpu.dot_dimension_numbers<[1], [0], [0], [1], [0, 0, 1, 1], [], []>} : vector<128x128xbf16>, vector<128x128xbf16>, vector<128x128xf32> -> vector<128x128xf32>
    %c0_21 = arith.constant 0 : index
    %c0_22 = arith.constant 0 : index
    %27 = vector.load %arg9[%c0_21, %c0_22] : memref<1x128xf32, #tpu.memory_space<vmem>>, vector<1x128xf32>
    %28 = vector.broadcast %27 : vector<1x128xf32> to vector<128x128xf32>
    %29 = arith.addf %26, %28 : vector<128x128xf32>
    %cst_23 = arith.constant 0.000000e+00 : f32
    %30 = vector.broadcast %cst_23 : f32 to vector<128x128xf32>
    %31 = arith.maximumf %29, %30 : vector<128x128xf32>
    %32 = arith.truncf %31 : vector<128x128xf32> to vector<128x128xbf16>
    %c0_24 = arith.constant 0 : index
    %c0_25 = arith.constant 0 : index
    %33 = vector.load %arg10[%c0_24, %c0_25] : memref<128x128xbf16, #tpu.memory_space<vmem>>, vector<128x128xbf16>
    %cst_26 = arith.constant dense<0.000000e+00> : vector<128x128xf32>
    %34 = tpu.matmul %32, %33, %cst_26 {dimension_numbers = #tpu.dot_dimension_numbers<[1], [0], [0], [1], [0, 0, 1, 1], [], []>} : vector<128x128xbf16>, vector<128x128xbf16>, vector<128x128xf32> -> vector<128x128xf32>
    %c0_27 = arith.constant 0 : index
    %c0_28 = arith.constant 0 : index
    %35 = vector.load %arg11[%c0_27, %c0_28] : memref<1x128xf32, #tpu.memory_space<vmem>>, vector<1x128xf32>
    %36 = vector.broadcast %35 : vector<1x128xf32> to vector<128x128xf32>
    %37 = arith.addf %34, %36 : vector<128x128xf32>
    %c0_29 = arith.constant 0 : index
    %c0_30 = arith.constant 0 : index
    %38 = vector.load %arg12[%c0_29, %c0_30] : memref<128x128xf32, #tpu.memory_space<vmem>>, vector<128x128xf32>
    tpu.vector_store %arg12[%c0_29, %c0_30], %37 {strides = array<i32>} : memref<128x128xf32, #tpu.memory_space<vmem>>, vector<128x128xf32>,
    return
  }
  func.func @transform_0(%arg0: i32) -> (i32, i32) {
    %c0_i32 = arith.constant 0 : i32
    %c0_i32_0 = arith.constant 0 : i32
    return %arg0, %c0_i32 : i32, i32
  }
  func.func @transform_1(%arg0: i32) -> (i32, i32) {
    %c0_i32 = arith.constant 0 : i32
    %c0_i32_0 = arith.constant 0 : i32
    %c0_i32_1 = arith.constant 0 : i32
    return %c0_i32, %c0_i32_0 : i32, i32
  }
  func.func @transform_2(%arg0: i32) -> (i32, i32) {
    %c0_i32 = arith.constant 0 : i32
    %c0_i32_0 = arith.constant 0 : i32
    %c0_i32_1 = arith.constant 0 : i32
    return %c0_i32, %c0_i32_0 : i32, i32
  }
  func.func @transform_3(%arg0: i32) -> (i32, i32) {
    %c0_i32 = arith.constant 0 : i32
    %c0_i32_0 = arith.constant 0 : i32
    %c0_i32_1 = arith.constant 0 : i32
    return %c0_i32, %c0_i32_0 : i32, i32
  }
  func.func @transform_4(%arg0: i32) -> (i32, i32) {
    %c0_i32 = arith.constant 0 : i32
    %c0_i32_0 = arith.constant 0 : i32
    %c0_i32_1 = arith.constant 0 : i32
    return %c0_i32, %c0_i32_0 : i32, i32
  }
  func.func @transform_5(%arg0: i32) -> (i32, i32) {
    %c0_i32 = arith.constant 0 : i32
    %c0_i32_0 = arith.constant 0 : i32
    %c0_i32_1 = arith.constant 0 : i32
    return %c0_i32, %c0_i32_0 : i32, i32
  }
  func.func @transform_6(%arg0: i32) -> (i32, i32) {
    %c0_i32 = arith.constant 0 : i32
    %c0_i32_0 = arith.constant 0 : i32
    %c0_i32_1 = arith.constant 0 : i32
    return %c0_i32, %c0_i32_0 : i32, i32
  }
  func.func @transform_7(%arg0: i32) -> (i32, i32) {
    %c0_i32 = arith.constant 0 : i32
    %c0_i32_0 = arith.constant 0 : i32
    %c0_i32_1 = arith.constant 0 : i32
    return %c0_i32, %c0_i32_0 : i32, i32
  }
  func.func @transform_8(%arg0: i32) -> (i32, i32) {
    %c0_i32 = arith.constant 0 : i32
    %c0_i32_0 = arith.constant 0 : i32
    %c0_i32_1 = arith.constant 0 : i32
    return %c0_i32, %c0_i32_0 : i32, i32
  }
  func.func @transform_9(%arg0: i32) -> (i32, i32) {
    %c0_i32 = arith.constant 0 : i32
    %c0_i32_0 = arith.constant 0 : i32
    %c0_i32_1 = arith.constant 0 : i32
    return %c0_i32, %c0_i32_0 : i32, i32
  }
  func.func @transform_10(%arg0: i32) -> (i32, i32) {
    %c0_i32 = arith.constant 0 : i32
    %c0_i32_0 = arith.constant 0 : i32
    %c0_i32_1 = arith.constant 0 : i32
    return %c0_i32, %c0_i32_0 : i32, i32
  }
  func.func @transform_11(%arg0: i32) -> (i32, i32) {
    %c0_i32 = arith.constant 0 : i32
    %c0_i32_0 = arith.constant 0 : i32
    return %arg0, %c0_i32 : i32, i32
  }
}

</mosaic_0001>

<bundles_post_ra>
// kernel: tpu_custom_call.1
= control target key start
LH: loop header
LB: loop body
LE: loop exit
PB: predicated region body
PF: predicated region fallthrough
CT: control target
= control target key end

     0   :  { %s2944_s0 = inlined_call_operand.hbm [shape: bf16[256,128], index: 0, kind: input, shape index: {}]   ;;  %s2945_s1 = inlined_call_operand.hbm [shape: bf16[128,256], index: 1, kind: input, shape index: {}]   ;;  %s2946_s2 = inlined_call_operand.vmem [shape: f32[1,256], index: 2, kind: input, shape index: {}]   ;;  %s2947_s3 = inlined_call_operand.hbm [shape: bf16[256,128], index: 3, kind: input, shape index: {}]   ;;  %s2948_s4 = inlined_call_operand.vmem [shape: f32[1,128], index: 4, kind: input, shape index: {}]   ;;  %s2949_s5 = inlined_call_operand.hbm [shape: bf16[128,128], index: 5, kind: input, shape index: {}]   ;;  %s2950_s6 = inlined_call_operand.vmem [shape: f32[1,128], index: 6, kind: input, shape index: {}]   ;;  %s2951_s7 = inlined_call_operand.hbm [shape: bf16[128,128], index: 7, kind: input, shape index: {}]   ;;  %s2952_s8 = inlined_call_operand.vmem [shape: f32[1,128], index: 8, kind: input, shape index: {}]   ;;  %s2953_s9 = inlined_call_operand.hbm [shape: bf16[128,128], index: 9, kind: input, shape index: {}]   ;;  %s2954_s10 = inlined_call_operand.vmem [shape: f32[1,128], index: 10, kind: input, shape index: {}]   ;;  %s2955_s11 = inlined_call_operand.hbm [shape: f32[256,128], index: 11, kind: output, shape index: {}]  }
   0x1   :  { %2962 = sst [smem:[#allocation19_spill]] %s2945_s1 }
   0x2   :  { %2963 = sst [smem:[#allocation20_spill]] %s2947_s3 }
   0x3   :  { %2964 = sst [smem:[#allocation21_spill]] %s2949_s5 }
   0x4   :  { %2965 = sst [smem:[#allocation22_spill]] %s2951_s7 }
   0x5   :  { %2966 = sst [smem:[#allocation23_spill]] %s2953_s9 }
   0x6   :  { %16 = vsyncpa [#allocation3], 0 }
   0x7   :  { %18 = vsyncpa [#allocation3 + $0x1], 0 }
   0x8   :  { %19 = vsyncpa [#allocation6], 0 }
   0x9   :  { %20 = vsyncpa [#allocation9], 0 }
   0xa   :  { %21 = vsyncpa [#allocation12], 0 }
   0xb   :  { %22 = vsyncpa [#allocation4], 0 }
   0xc   :  { %24 = vsyncpa [#allocation4 + $0x1], 0  ;;  %s2577_s17 = smov 0   ;;  %s2579_s18 = smov 0  }
   0xd   :  { %s2581_s19 = smov 0   ;;  %s2583_s20 = smov 0  }
   0xe LB: > { %s2503_s21 = smov [#allocation5]   ;;  %s2598_s23 = sadd.s32 4294967295, %s2501_s20   ;;  %s2501_s20 = sphi %s2583_s20, %s2995_s20   ;;  %s2497_s19 = sphi %s2581_s19, %s2994_s19   ;;  %s2493_s18 = sphi %s2579_s18, %s2993_s18   ;;  %s2489_s17 = sphi %s2577_s17, %s2992_s17  }
   0xf   : > { %s309_s22 = sshll.u32 %s2503_s21, 4  ;;  %p1774_p0 = scmp.ge.s32.totalorder %s2501_s20, 1  ;;  %s310_s22 = int_to_ptr.vmem [resolvable:$true] %s309_s22 }
  0x10   : > { %p2958_p1 = scmp.eq.s32.totalorder %s2598_s23, 0  ;;  %p297_p2 = scmp.lt.s32.totalorder %s2501_s20, 3 }
  0x11   : > { %s2504_s26 = smov [#allocation8]   ;;  %s2505_s28 = smov [#allocation7]  }
  0x12   : > { %p2603_p3 = pnand %p1774_p0, %p297_p2  ;;  %s341_s27 = sshll.u32 %s2504_s26, 4  ;;  %s2616_s27 = int_to_ptr.vmem [resolvable:$true] %s341_s27 }
  0x13   : > { %s2618_s29 = sshll.u32 %s2505_s28, 4  ;;  %s2278_s12 = scalar_lea.vmem %s310_s22, 2048  ;;  %s326_s29 = int_to_ptr.vmem [resolvable:$true] %s2618_s29 }
  0x14   : > { %s2967_s24 = scalar_select %p2603_p3, 1, 0 }
  0x15   : > { %p2115_p5 = pneg %p2603_p3  ;;  %p2279_p8 = scmp.ne.s32.totalorder %s310_s22, %s2278_s12 }
  0x16   : > { %p2286_p11 = scmp.lt.s32.totalorder %s310_s22, %s310_s22  ;;  %p2287_p12 = scmp.lt.s32.totalorder %s2278_s12, %s2278_s12 }
  0x17   : > { %p2612_p6 = pnand %p2115_p5, %p2958_p1 }
  0x18   : > { %p2288_p13 = por %p2287_p12, %p2286_p11 }
  0x19   : > { %p2622_p7 = pneg %p2612_p6 }
  0x1b   : > { %p2281_p9 = pnand %p2279_p8, %p2622_p7 }
  0x1d   : > { %p2282_p10 = pneg %p2281_p9 }
  0x1f   : > { %p2289_p0 = pnand %p2288_p13, %p2282_p10 }
  0x21   : > { %2292 = shalt.err (!%p2289_p0)
}
  0x22   : > { %s2506_s13 = smov 128   ;;  %s2507_s14 = smov 8  }
  0x23   : > { %s2970_s1 = sld [smem:[#allocation19_spill]]  ;;  %s2304_s21 = scalar_lea.vmem %s2616_s27, 1024 }
  0x24   : > { %p2305_p2 = scmp.ne.s32.totalorder %s2616_s27, %s2304_s21  ;;  %p2312_p9 = scmp.lt.s32.totalorder %s2616_s27, %s2616_s27 }
  0x25   : > { %p2313_p10 = scmp.lt.s32.totalorder %s2304_s21, %s2304_s21 }
  0x26   : > { %p2307_p5 = pnand %p2305_p2, %p2622_p7 }
  0x27   : > { %p2314_p11 = por %p2313_p10, %p2312_p9 }
  0x28   : > { %p2308_p8 = pneg %p2307_p5 }
  0x29   : > { %2118 = dma.hbm_to_vmem [thread:$0]  (!%p2612_p6), %s2970_s1, 2048, %s310_s22, [#allocation6], %s2506_s13, %s2506_s13, %s2507_s14  }
  0x2a   : > { %p2315_p12 = pnand %p2314_p11, %p2308_p8 }
  0x2c   : > { %2318 = shalt.err (!%p2315_p12)
}
  0x2d   : > { %s2956_s26 = smov 64   ;;  %s2957_s28 = smov 4  }
  0x2e   : > { %s2971_s5 = sld [smem:[#allocation21_spill]]  ;;  %s2330_s13 = scalar_lea.vmem %s326_s29, 2048 }
  0x2f   : > { %p2331_p13 = scmp.ne.s32.totalorder %s326_s29, %s2330_s13  ;;  %p2338_p5 = scmp.lt.s32.totalorder %s326_s29, %s326_s29 }
  0x30   : > { %p2339_p8 = scmp.lt.s32.totalorder %s2330_s13, %s2330_s13 }
  0x31   : > { %p2333_p0 = pnand %p2331_p13, %p2622_p7 }
  0x32   : > { %p2340_p9 = por %p2339_p8, %p2338_p5 }
  0x33   : > { %p2334_p2 = pneg %p2333_p0 }
  0x34   : > { %2124 = dma.hbm_to_vmem [thread:$0]  (!%p2612_p6), %s2971_s5, 1024, %s2616_s27, [#allocation9], %s2956_s26, %s2956_s26, %s2957_s28  }
  0x35   : > { %p2341_p10 = pnand %p2340_p9, %p2334_p2 }
  0x37   : > { %2344 = shalt.err (!%p2341_p10)
}
  0x38   : > { %s2972_s3 = sld [smem:[#allocation20_spill]]  ;;  %s2510_s27 = smov [#allocation10]  }
  0x39   : > { %s357_s16 = sshll.u32 %s2510_s27, 4  ;;  %s2511_s21 = smov [#allocation11]   ;;  %s358_s16 = int_to_ptr.vmem [resolvable:$true] %s357_s16 }
  0x3a   : > { %s373_s22 = sshll.u32 %s2511_s21, 4  ;;  %s2356_s12 = scalar_lea.vmem %s358_s16, 1024  ;;  %s374_s22 = int_to_ptr.vmem [resolvable:$true] %s373_s22 }
  0x3b   : > { %p2357_p11 = scmp.ne.s32.totalorder %s358_s16, %s2356_s12  ;;  %p2364_p0 = scmp.lt.s32.totalorder %s358_s16, %s358_s16 }
  0x3c   : > { %p2365_p2 = scmp.lt.s32.totalorder %s2356_s12, %s2356_s12 }
  0x3d   : > { %p2359_p12 = pnand %p2357_p11, %p2622_p7 }
  0x3e   : > { %2121 = dma.hbm_to_vmem [thread:$0]  (!%p2612_p6), %s2972_s3, 2048, %s326_s29, [#allocation6], %s2956_s26, %s2956_s26, %s2957_s28  }
  0x3f   : > { %p2360_p13 = pneg %p2359_p12  ;;  %p2366_p5 = por %p2365_p2, %p2364_p0 }
  0x41   : > { %p2367_p8 = pnand %p2366_p5, %p2360_p13 }
  0x43   : > { %2370 = shalt.err (!%p2367_p8)
}
  0x44   : > { %s2973_s7 = sld [smem:[#allocation22_spill]]  ;;  %s2382_s14 = scalar_lea.vmem %s374_s22, 1024 }
  0x45   : > { %p2383_p9 = scmp.ne.s32.totalorder %s374_s22, %s2382_s14  ;;  %p2390_p12 = scmp.lt.s32.totalorder %s374_s22, %s374_s22 }
  0x46   : > { %p2391_p0 = scmp.lt.s32.totalorder %s2382_s14, %s2382_s14 }
  0x47   : > { %p2385_p10 = pnand %p2383_p9, %p2622_p7 }
  0x48   : > { %p2392_p13 = por %p2391_p0, %p2390_p12 }
  0x49   : > { %p2386_p11 = pneg %p2385_p10 }
  0x4a   : > { %2127 = dma.hbm_to_vmem [thread:$0]  (!%p2612_p6), %s2973_s7, 1024, %s358_s16, [#allocation9], %s2956_s26, %s2956_s26, %s2957_s28  }
  0x4b   : > { %p2393_p2 = pnand %p2392_p13, %p2386_p11 }
  0x4d   : > { %2396 = shalt.err (!%p2393_p2)
}
  0x4e   : > { %s2974_s9 = sld [smem:[#allocation23_spill]]  ;;  %s1773_s25 = sadd.s32 4294967294, %s2501_s20  }
  0x4f   : > { %s2681_s30 = sadd.s32 1, %s2501_s20   ;;  %s37_s16 = sadd.s32 1, %s2497_s19 }
  0x50   : > { %s34_s21 = ssub.s32 %s2501_s20, %s2681_s30  ;;  %p44_p7 = scmp.ne.s32.totalorder %s2497_s19, %s2493_s18 }
  0x51   : > { %p35_p5 = scmp.eq.s32.totalorder %s34_s21, 0  ;;  %p45_p8 = scmp.eq.s32.totalorder %s2501_s20, 0 }
  0x52   : > { %p50_p9 = scmp.ne.s32.totalorder %s2493_s18, %s2489_s17  ;;  %p284_p10 = scmp.eq.s32.totalorder %s2598_s23, 1 }
  0x53   : > { %s2693_s12 = scalar_select %p35_p5, %s2497_s19, %s37_s16  }
  0x54   : > { %2130 = dma.hbm_to_vmem [thread:$0]  (!%p2612_p6), %s2974_s9, 1024, %s374_s22, [#allocation12], %s2956_s26, %s2956_s26, %s2957_s28  }
  0x55   : > { %p46_p11 = por %p45_p8, %p44_p7  ;;  %p2697_p12 = por %p2958_p1, %p50_p9 }
  0x56   : > { %p2701_p6 = por %p284_p10, %p44_p7  ;;  %p290_p0 = scmp.eq.s32.totalorder %s1773_s25, 1 }
  0x57   : > { %s2975_s29 = scalar_select %p2697_p12, 1, 0 }
  0x58   : > { %s2976_s22 = scalar_select %p2701_p6, 1, 0 }
  0x59   : > { %p2144_p13 = scmp.lt.s32.totalorder %s2501_s20, 2  ;;  %s390_s13 = sand.u32 1, %s2497_s19  }
  0x5a   : > { %p2707_p2 = por %p290_p0, %p50_p9  ;;  %s1781_s15 = sshll.u32 %s390_s13, 6 }
  0x5b   : > { %s1865_s27 = sshll.u32 %s2501_s20, 10  ;;  %s394_s28 = scalar_lea.vmem [#allocation2], %s1781_s15 }
  0x5c   : > { %s2977_s14 = scalar_select %p2707_p2, 1, 0 }
  0x5d   : > { %s2715_s26 = scalar_lea.hbm %s2944_s0, %s1865_s27  ;;  %s401_s1 = sshll.u32 %s394_s28, 4  ;;  %s2721_s1 = int_to_ptr.vmem [resolvable:$true] %s401_s1 }
  0x5e   : > { %p2717_p7 = pnand %p2144_p13, %p46_p11  ;;  %s2723_s3 = scalar_lea.sflag [#allocation3], %s390_s13 }
  0x5f   : > { %s2397_s5 = scalar_lea.hbm %s2715_s26, 1024  ;;  %s2402_s15 = scalar_lea.hbm %s2944_s0, 2048 }
  0x60   : > { %p2398_p5 = scmp.ne.s32.totalorder %s2715_s26, %s2397_s5  ;;  %p2399_p8 = pneg %p2717_p7 }
  0x61   : > { %p2403_p11 = scmp.lt.s32.totalorder %s2715_s26, %s2944_s0  ;;  %p2404_p0 = scmp.lt.s32.totalorder %s2402_s15, %s2397_s5 }
  0x62   : > { %p2400_p9 = pnand %p2399_p8, %p2398_p5 }
  0x63   : > { %p2405_p13 = por %p2404_p0, %p2403_p11 }
  0x64   : > { %p2401_p10 = pneg %p2400_p9 }
  0x66   : > { %p2406_p4 = pnand %p2405_p13, %p2401_p10 }
  0x68   : > { %2409 = shalt.err (!%p2406_p4)
}
  0x69   : > { %s2410_s13 = scalar_lea.vmem %s2721_s1, 1024  ;;  %s2512_s7 = smov [#allocation2]  }
  0x6a   : > { %p2411_p1 = scmp.ne.s32.totalorder %s2721_s1, %s2410_s13  ;;  %s2415_s9 = sshll.u32 %s2512_s7, 4  ;;  %s2416_s9 = int_to_ptr.vmem [resolvable:$false] %s2415_s9 }
  0x6b   : > { %s2417_s27 = scalar_lea.vmem %s2416_s9, 2048  ;;  %p2418_p9 = scmp.lt.s32.totalorder %s2721_s1, %s2416_s9 }
  0x6c   : > { %p2413_p2 = pnand %p2411_p1, %p2399_p8  ;;  %p2419_p6 = scmp.lt.s32.totalorder %s2417_s27, %s2410_s13 }
  0x6e   : > { %p2414_p5 = pneg %p2413_p2  ;;  %p2420_p12 = por %p2419_p6, %p2418_p9 }
  0x70   : > { %p2421_p3 = pnand %p2420_p12, %p2414_p5 }
  0x72   : > { %2424 = shalt.err (!%p2421_p3)
}
  0x73   : > { %s2979_s5 = smov 4   ;;  %s2980_s16 = smov 64  }
  0x74   : > { %2134 = dma.hbm_to_vmem [thread:$0]  (!%p2717_p7), %s2715_s26, 1024, %s2721_s1, %s2723_s3, %s2980_s16, %s2980_s16, %s2979_s5  }
  0x75   : > { %p2981_p1 = scmp.ne.s32.totalorder %s2967_s24, 0 }
  0x76   : > { %s2750_s7 = sand.u32 (!%p2981_p1), 1, %s2493_s18   ;;  %p2982_p3 = scmp.ne.s32.totalorder (!%p2981_p1), %s2975_s29, 0 }
  0x77   : > { %413 = sbr.rel (%p2981_p1) target bundleno = 1264 (0x4f0), region = 64  ;;  %s1785_s9 = sshll.u32 (!%p2981_p1), %s2750_s7, 6 }
  0x78   : > { %s416_s15 = scalar_lea.sflag (!%p2981_p1), [#allocation3], %s2750_s7  ;;  %s2754_s28 = scalar_lea.vmem (!%p2981_p1), [#allocation2], %s1785_s9 }
  0x7c   : > { %2468 = dma.done.wait (%p2982_p3), %s416_s15, 1024  }
  0x7d   : > { %2470 = vsyncadd (%p2982_p3), %s416_s15, 4294966272  ;;  %p2983_p4 = scmp.eq.s32.totalorder %s2598_s23, 0 }
  0x7f   : > { %2472 = dma.done.wait (%p2983_p4), [#allocation6], 4096   ;;  %p2984_p12 = pmov %p2983_p4 }
  0x80   : > { %p2985_p6 = pmov %p2983_p4 }
  0x81   : > { %2474 = vsyncadd (%p2984_p12), [#allocation6], 4294963200 }
  0x82   : > { %2476 = dma.done.wait (%p2985_p6), [#allocation9], 2048   ;;  %p2986_p2 = pmov %p2983_p4 }
  0x84   : > { %2478 = vsyncadd (%p2986_p2), [#allocation9], 4294965248  ;;  %p2987_p7 = pmov %p2986_p2 }
  0x85   : > { %p2988_p8 = pmov %p2986_p2 }
  0x86   : > { %2480 = dma.done.wait (%p2987_p7), [#allocation12], 1024  }
  0x87   : > { %2482 = vsyncadd (%p2988_p8), [#allocation12], 4294966272  ;;  %v2513_v0 = vmov 0   ;;  %v2195_v1 = vld [vmem:[#allocation5 + $0x74] ss:$8 sps:$4 sm:$0xff]   ;;  %v2231_v19 = vld [vmem:[#allocation7 + $0x68] sm:$0xff]   ;;  %v515_v44 = vlaneseq }
  0x88   : > { %685 = vmatprep.mubr.bf16.mxu0 %v2513_v0  ;;  %v2197_v2 = vld [vmem:[#allocation5 + $0x70] ss:$8 sps:$4 sm:$0xff]   ;;  %653 = vmatprep.subr.bf16.mxu0 %v2195_v1  ;;  %v2198_v3 = vld [vmem:[#allocation5 + $0x64] ss:$8 sps:$4 sm:$0xff]   ;;  %v2200_v4 = vld [vmem:[#allocation5 + $0x60] ss:$8 sps:$4 sm:$0xff]  }
  0x89   : > { %654 = vmatpush1.bf16.msra.mxu0 %v2197_v2  ;;  %v2201_v5 = vld [vmem:[#allocation5 + $0x54] ss:$8 sps:$4 sm:$0xff]   ;;  %v2203_v6 = vld [vmem:[#allocation5 + $0x50] ss:$8 sps:$4 sm:$0xff]   ;;  %v2204_v7 = vld [vmem:[#allocation5 + $0x44] ss:$8 sps:$4 sm:$0xff]  }
  0x8a   : > { %655 = vmatprep.subr.bf16.mxu0 %v2198_v3  ;;  %v2206_v8 = vld [vmem:[#allocation5 + $0x40] ss:$8 sps:$4 sm:$0xff]   ;;  %v2207_v9 = vld [vmem:[#allocation5 + $0x34] ss:$8 sps:$4 sm:$0xff]   ;;  %v2209_v10 = vld [vmem:[#allocation5 + $0x30] ss:$8 sps:$4 sm:$0xff]  }
  0x8b   : > { %v2210_v11 = vld [vmem:[#allocation5 + $0x24] ss:$8 sps:$4 sm:$0xff]   ;;  %v2212_v12 = vld [vmem:[#allocation5 + $0x20] ss:$8 sps:$4 sm:$0xff]   ;;  %v2213_v13 = vld [vmem:[#allocation5 + $0x14] ss:$8 sps:$4 sm:$0xff]  }
  0x8c   : > { %v2227_v14 = vld [vmem:[#allocation7 + $0x78] sm:$0xff]   ;;  %v2229_v17 = vld [vmem:[#allocation7 + $0x70] sm:$0xff]   ;;  %v2216_v20 = vld [vmem:[#allocation5 + $0x4] ss:$8 sps:$4 sm:$0xff]   ;;  %v516_v45 = vshrl.u32 %v515_v44, 7  ;;  %s1791_s27 = sshll.u32 %s2750_s7, 7 }
  0x8d   : > { %656 = vmatpush1.bf16.msra.mxu0 %v2200_v4  ;;  %v2228_v15 = vld [vmem:[#allocation7 + $0x38] sm:$0xff]   ;;  %1867 = vmatprep.subr.bf16.mxu1 %v2227_v14  ;;  %v2230_v18 = vld [vmem:[#allocation7 + $0x30] sm:$0xff]   ;;  %v2218_v21 = vld [vmem:[#allocation5] ss:$8 sps:$4 sm:$0xff]   ;;  %s2876_s9 = scalar_lea.vmem [#allocation13], %s1791_s27  ;;  %s1866_s15 = sshll.u32 %s2598_s23, 11 }
  0x8e   : > { %657 = vmatprep.subr.bf16.mxu0 %v2201_v5  ;;  %v2215_v16 = vld [vmem:[#allocation5 + $0x10] ss:$8 sps:$4 sm:$0xff]   ;;  %1868 = vmatpush3.bf16.msra.mxu1 %v2228_v15  ;;  %v2232_v22 = vld [vmem:[#allocation7 + $0x28] sm:$0xff]   ;;  %v2233_v23 = vld [vmem:[#allocation7 + $0x60] sm:$0xff]   ;;  %v521_v46 = vsub.s32 1, %v516_v45  ;;  %v517_v47 = vsub.s32 0, %v516_v45  ;;  %s2897_s24 = scalar_lea.hbm %s2955_s11, %s1866_s15 }
  0x8f   : > { %1869 = vmatprep.subr.bf16.mxu1 %v2229_v17  ;;  %v2219_v24 = vld [vmem:[%s2754_s28] sm:$0xff]   ;;  %v2235_v26 = vld [vmem:[#allocation7 + $0x58] sm:$0xff]   ;;  %v2220_v28 = vld [vmem:[%s2754_s28 + $0x8] sm:$0xff]   ;;  %s1639_s26 = scalar_lea.sflag [#allocation4], %s2750_s7  ;;  %p2989_p11 = scmp.ne.s32.totalorder %s2976_s22, 0 }
  0x90   : > { %v2234_v25 = vld [vmem:[#allocation7 + $0x20] sm:$0xff]   ;;  %v2236_v27 = vld [vmem:[#allocation7 + $0x18] sm:$0xff]   ;;  %v2221_v29 = vld [vmem:[%s2754_s28 + $0x10] sm:$0xff]   ;;  %s2514_s29 = smov [#allocation13]  }
  0x91   : > { %658 = vmatpush1.bf16.msra.mxu0 %v2203_v6  ;;  %v2222_v30 = vld [vmem:[%s2754_s28 + $0x18] sm:$0xff]   ;;  %v2223_v31 = vld [vmem:[%s2754_s28 + $0x20] sm:$0xff]   ;;  %v2224_v32 = vld [vmem:[%s2754_s28 + $0x28] sm:$0xff]   ;;  %s2429_s25 = sshll.u32 %s2514_s29, 4  ;;  %s2430_s25 = int_to_ptr.vmem [resolvable:$false] %s2429_s25 }
  0x92   : > { %659 = vmatprep.subr.bf16.mxu0 %v2204_v7  ;;  %1870 = vmatpush3.bf16.msra.mxu1 %v2230_v18  ;;  %v2225_v33 = vld [vmem:[%s2754_s28 + $0x30] sm:$0xff]   ;;  %v2226_v34 = vld [vmem:[%s2754_s28 + $0x38] sm:$0xff]   ;;  %v2239_v37 = vld [vmem:[#allocation7 + $0x48] sm:$0xff]   ;;  %s1652_s28 = sshll.u32 %s2876_s9, 4  ;;  %s2431_s21 = scalar_lea.vmem %s2430_s25, 4096  ;;  %s2899_s28 = int_to_ptr.vmem [resolvable:$true] %s1652_s28 }
  0x93   : > { %1871 = vmatprep.subr.bf16.mxu1 %v2231_v19  ;;  %v2237_v35 = vld [vmem:[#allocation7 + $0x50] sm:$0xff]   ;;  %v2240_v38 = vld [vmem:[#allocation7 + $0x8] sm:$0xff]   ;;  %v2241_v39 = vld [vmem:[#allocation7 + $0x40] sm:$0xff]   ;;  %s2425_s23 = scalar_lea.vmem %s2899_s28, 2048  ;;  %p2432_p5 = scmp.lt.s32.totalorder %s2899_s28, %s2430_s25 }
  0x94   : > { %v2238_v36 = vld [vmem:[#allocation7 + $0x10] sm:$0xff]   ;;  %v2242_v40 = vld [vmem:[#allocation7] sm:$0xff]   ;;  %v2243_v41 = vld [vmem:[#allocation8 + $0x38] sm:$0xff]   ;;  %p2426_p10 = scmp.ne.s32.totalorder %s2899_s28, %s2425_s23  ;;  %p2433_p9 = scmp.lt.s32.totalorder %s2431_s21, %s2425_s23 }
  0x95   : > { %660 = vmatpush1.bf16.msra.mxu0 %v2206_v8  ;;  %v2244_v42 = vld [vmem:[#allocation8 + $0x30] sm:$0xff]   ;;  %v2245_v43 = vld [vmem:[#allocation8 + $0x28] sm:$0xff]   ;;  %v513_v48 = vld [vmem:[%s2946_s2] sm:$0x3] }
  0x96   : > { %661 = vmatprep.subr.bf16.mxu0 %v2207_v9  ;;  %1872 = vmatpush3.bf16.msra.mxu1 %v2232_v22  ;;  %v2791_v50 = vrot.slane %v513_v48, %v521_v46  ;;  %v2793_v51 = vrot.slane %v513_v48, %v517_v47  ;;  %p2427_p0 = pnand %p2426_p10, %p2989_p11  ;;  %p2434_p1 = por %p2433_p9, %p2432_p5 }
  0x97   : > { %1873 = vmatprep.subr.bf16.mxu1 %v2233_v23 }
  0x98   : > { %p2428_p13 = pneg %p2427_p0 }
  0x99   : > { %662 = vmatpush1.bf16.msra.mxu0 %v2209_v10 }
  0x9a   : > { %663 = vmatprep.subr.bf16.mxu0 %v2210_v11  ;;  %1874 = vmatpush3.bf16.msra.mxu1 %v2234_v25  ;;  %p2435_p3 = pnand %p2434_p1, %p2428_p13 }
  0x9b   : > { %1875 = vmatprep.subr.bf16.mxu1 %v2235_v26 }
  0x9d   : > { %664 = vmatpush1.bf16.msra.mxu0 %v2212_v12 }
  0x9e   : > { %665 = vmatprep.subr.bf16.mxu0 %v2213_v13  ;;  %1876 = vmatpush3.bf16.msra.mxu1 %v2236_v27 }
  0x9f   : > { %1877 = vmatprep.subr.bf16.mxu1 %v2237_v35 }
  0xa1   : > { %666 = vmatpush1.bf16.msra.mxu0 %v2215_v16 }
  0xa2   : > { %667 = vmatprep.subr.bf16.mxu0 %v2216_v20  ;;  %1878 = vmatpush3.bf16.msra.mxu1 %v2238_v36 }
  0xa3   : > { %1879 = vmatprep.subr.bf16.mxu1 %v2239_v37 }
  0xa5   : > { %668 = vmatpush1.bf16.msra.mxu0 %v2218_v21 }
  0xa6   : > { %1880 = vmatpush3.bf16.msra.mxu1 %v2240_v38  ;;  %1979 = vmatprep.subr.bf16.mxu0 %v2243_v41 }
  0xa7   : > { %1881 = vmatprep.subr.bf16.mxu1 %v2241_v39 }
  0xa8   : > { %686 = vmatmul.mubr.bf16.vlgmr.msra.gmra.mxu0 %v2219_v24 }
  0xa9   : > { %695 = vmatprep.mubr.bf16.mxu0 %v2513_v0  ;;  %1980 = vmatpush3.bf16.msra.mxu0 %v2243_v41 }
  0xaa   : > { %1882 = vmatpush3.bf16.msra.mxu1 %v2242_v40  ;;  %1981 = vmatprep.subr.bf16.mxu0 %v2244_v42 }
  0xad   : > { %1982 = vmatpush3.bf16.msra.mxu0 %v2244_v42 }
  0xae   : > { %1983 = vmatprep.subr.bf16.mxu0 %v2245_v43 }
  0xb0   : > { %696 = vmatmul.mubr.bf16.gmra.mxu0 %v2220_v28 }
  0xb1   : > { %705 = vmatprep.mubr.bf16.mxu0 %v2513_v0  ;;  %1984 = vmatpush3.bf16.msra.mxu0 %v2245_v43 }
  0xb8   : > { %706 = vmatmul.mubr.bf16.gmra.mxu0 %v2221_v29 }
  0xb9   : > { %715 = vmatprep.mubr.bf16.mxu0 %v2513_v0 }
  0xc0   : > { %716 = vmatmul.mubr.bf16.gmra.mxu0 %v2222_v30 }
  0xc1   : > { %725 = vmatprep.mubr.bf16.mxu0 %v2513_v0 }
  0xc8   : > { %726 = vmatmul.mubr.bf16.gmra.mxu0 %v2223_v31 }
  0xc9   : > { %735 = vmatprep.mubr.bf16.mxu0 %v2513_v0 }
  0xd0   : > { %736 = vmatmul.mubr.bf16.gmra.mxu0 %v2224_v32 }
  0xd1   : > { %745 = vmatprep.mubr.bf16.mxu0 %v2513_v0 }
  0xd8   : > { %746 = vmatmul.mubr.bf16.gmra.mxu0 %v2225_v33 }
  0xd9   : > { %755 = vmatprep.mubr.bf16.mxu0 %v2513_v0 }
  0xe0   : > { %756 = vmatmul.mubr.bf16.gmra.mxu0 %v2226_v34 }
 0x168   : > { %v687_v49 = vpop.f32.mrf.mxu0 }
 0x169   : > { %v688_v56 = vadd.f32 %v687_v49, %v2793_v51 }
 0x16a   : > { %v689_v52 = vpop.f32.mrf.mxu0 }
 0x16b   : > { %v690_v54 = vadd.f32 %v689_v52, %v2791_v50  ;;  %v766_v63 = vmax.f32 %v688_v56, 0.0 }
 0x16c   : > { %v691_v53 = vpop.f32.mrf.mxu0 }
 0x16d   : > { %v692_v55 = vadd.f32 %v691_v53, %v2793_v51  ;;  %v767_v61 = vmax.f32 %v690_v54, 0.0 }
 0x16e   : > { %v693_v57 = vpop.f32.mrf.mxu0 }
 0x16f   : > { %v694_v58 = vadd.f32 %v693_v57, %v2791_v50  ;;  %v768_v59 = vmax.f32 %v692_v55, 0.0 }
 0x170   : > { %v697_v60 = vpop.f32.mrf.mxu0 }
 0x171   : > { %v769_v62 = vmax.f32 %v694_v58, 0.0  ;;  %v798_v2 = vpack.c.bf16 %v768_v59, %v766_v63  ;;  %v698_v6 = vadd.f32 %v697_v60, %v2793_v51 }
 0x172   : > { %v699_v0 = vpop.f32.mrf.mxu0 }
 0x173   : > { %v799_v1 = vpack.c.bf16 %v769_v62, %v767_v61  ;;  %v700_v4 = vadd.f32 %v699_v0, %v2791_v50  ;;  %v770_v13 = vmax.f32 %v698_v6, 0.0 }
 0x174   : > { %v701_v3 = vpop.f32.mrf.mxu0 }
 0x175   : > { %v702_v5 = vadd.f32 %v701_v3, %v2793_v51  ;;  %981 = vmatprep.mubr.bf16.mxu1 %v799_v1  ;;  %v771_v11 = vmax.f32 %v700_v4, 0.0 }
 0x176   : > { %v703_v7 = vpop.f32.mrf.mxu0  ;;  %982 = vmatmul.mubr.bf16.vlgmr.msra.gmra.mxu1 %v798_v2 }
 0x177   : > { %v704_v8 = vadd.f32 %v703_v7, %v2791_v50  ;;  %v772_v9 = vmax.f32 %v702_v5, 0.0 }
 0x178   : > { %v707_v10 = vpop.f32.mrf.mxu0 }
 0x179   : > { %v773_v12 = vmax.f32 %v704_v8, 0.0  ;;  %v800_v16 = vpack.c.bf16 %v772_v9, %v770_v13  ;;  %v708_v20 = vadd.f32 %v707_v10, %v2793_v51 }
 0x17a   : > { %v709_v14 = vpop.f32.mrf.mxu0 }
 0x17b   : > { %v801_v15 = vpack.c.bf16 %v773_v12, %v771_v11  ;;  %v710_v18 = vadd.f32 %v709_v14, %v2791_v50  ;;  %v774_v27 = vmax.f32 %v708_v20, 0.0 }
 0x17c   : > { %v711_v17 = vpop.f32.mrf.mxu0 }
 0x17d   : > { %v712_v19 = vadd.f32 %v711_v17, %v2793_v51  ;;  %989 = vmatprep.mubr.bf16.mxu1 %v801_v15  ;;  %v775_v25 = vmax.f32 %v710_v18, 0.0 }
 0x17e   : > { %v713_v21 = vpop.f32.mrf.mxu0  ;;  %990 = vmatmul.mubr.bf16.gmra.mxu1 %v800_v16 }
 0x17f   : > { %v714_v22 = vadd.f32 %v713_v21, %v2791_v50  ;;  %v776_v23 = vmax.f32 %v712_v19, 0.0 }
 0x180   : > { %v717_v24 = vpop.f32.mrf.mxu0 }
 0x181   : > { %v777_v26 = vmax.f32 %v714_v22, 0.0  ;;  %v802_v30 = vpack.c.bf16 %v776_v23, %v774_v27  ;;  %v718_v34 = vadd.f32 %v717_v24, %v2793_v51 }
 0x182   : > { %v719_v28 = vpop.f32.mrf.mxu0 }
 0x183   : > { %v803_v29 = vpack.c.bf16 %v777_v26, %v775_v25  ;;  %v720_v32 = vadd.f32 %v719_v28, %v2791_v50  ;;  %v778_v41 = vmax.f32 %v718_v34, 0.0 }
 0x184   : > { %v721_v31 = vpop.f32.mrf.mxu0 }
 0x185   : > { %v722_v33 = vadd.f32 %v721_v31, %v2793_v51  ;;  %997 = vmatprep.mubr.bf16.mxu1 %v803_v29  ;;  %v779_v39 = vmax.f32 %v720_v32, 0.0 }
 0x186   : > { %v723_v35 = vpop.f32.mrf.mxu0  ;;  %998 = vmatmul.mubr.bf16.gmra.mxu1 %v802_v30 }
 0x187   : > { %v724_v36 = vadd.f32 %v723_v35, %v2791_v50  ;;  %v780_v37 = vmax.f32 %v722_v33, 0.0 }
 0x188   : > { %v727_v38 = vpop.f32.mrf.mxu0 }
 0x189   : > { %v781_v40 = vmax.f32 %v724_v36, 0.0  ;;  %v804_v44 = vpack.c.bf16 %v780_v37, %v778_v41  ;;  %v728_v48 = vadd.f32 %v727_v38, %v2793_v51  ;;  %v2246_v37 = vld [vmem:[#allocation8 + $0x20] sm:$0xff]   ;;  %v2247_v38 = vld [vmem:[#allocation8 + $0x18] sm:$0xff]   ;;  %v2252_v41 = vld [vmem:[#allocation10 + $0x30] sm:$0xff]  }
 0x18a   : > { %v729_v42 = vpop.f32.mrf.mxu0  ;;  %1985 = vmatprep.subr.bf16.mxu0 %v2246_v37 }
 0x18b   : > { %v805_v43 = vpack.c.bf16 %v781_v40, %v779_v39  ;;  %v730_v46 = vadd.f32 %v729_v42, %v2791_v50  ;;  %v782_v57 = vmax.f32 %v728_v48, 0.0  ;;  %1986 = vmatpush3.bf16.msra.mxu0 %v2246_v37  ;;  %v2248_v39 = vld [vmem:[#allocation8 + $0x10] sm:$0xff]   ;;  %v2251_v40 = vld [vmem:[#allocation10 + $0x38] sm:$0xff]   ;;  %v2253_v42 = vld [vmem:[#allocation10 + $0x28] sm:$0xff]  }
 0x18c   : > { %v731_v45 = vpop.f32.mrf.mxu0  ;;  %1987 = vmatprep.subr.bf16.mxu0 %v2247_v38  ;;  %2011 = vmatprep.subr.bf16.mxu1 %v2251_v40  ;;  %v2830_v48 = vld [vmem:[%s2948_s4] ss:$0 sm:$0xff] }
 0x18d   : > { %v732_v47 = vadd.f32 %v731_v45, %v2793_v51  ;;  %1005 = vmatprep.mubr.bf16.mxu1 %v805_v43  ;;  %v783_v55 = vmax.f32 %v730_v46, 0.0  ;;  %2012 = vmatpush3.bf16.msra.mxu1 %v2251_v40  ;;  %v2254_v43 = vld [vmem:[#allocation10 + $0x20] sm:$0xff]  }
 0x18e   : > { %v733_v49 = vpop.f32.mrf.mxu0  ;;  %1006 = vmatmul.mubr.bf16.gmra.mxu1 %v804_v44  ;;  %2013 = vmatprep.subr.bf16.mxu1 %v2252_v41  ;;  %v2255_v44 = vld [vmem:[#allocation10 + $0x18] sm:$0xff]  }
 0x18f   : > { %v734_v52 = vadd.f32 %v733_v49, %v2791_v50  ;;  %v784_v53 = vmax.f32 %v732_v47, 0.0  ;;  %1988 = vmatpush3.bf16.msra.mxu0 %v2247_v38 }
 0x190   : > { %v737_v54 = vpop.f32.mrf.mxu0  ;;  %1989 = vmatprep.subr.bf16.mxu0 %v2248_v39 }
 0x191   : > { %v785_v56 = vmax.f32 %v734_v52, 0.0  ;;  %v806_v60 = vpack.c.bf16 %v784_v53, %v782_v57  ;;  %v738_v0 = vadd.f32 %v737_v54, %v2793_v51  ;;  %2014 = vmatpush3.bf16.msra.mxu1 %v2252_v41 }
 0x192   : > { %v739_v58 = vpop.f32.mrf.mxu0  ;;  %2015 = vmatprep.subr.bf16.mxu1 %v2253_v42 }
 0x193   : > { %v807_v59 = vpack.c.bf16 %v785_v56, %v783_v55  ;;  %v740_v62 = vadd.f32 %v739_v58, %v2791_v50  ;;  %v786_v7 = vmax.f32 %v738_v0, 0.0  ;;  %1990 = vmatpush3.bf16.msra.mxu0 %v2248_v39 }
 0x194   : > { %v741_v61 = vpop.f32.mrf.mxu0 }
 0x195   : > { %v742_v63 = vadd.f32 %v741_v61, %v2793_v51  ;;  %1013 = vmatprep.mubr.bf16.mxu1 %v807_v59  ;;  %v787_v5 = vmax.f32 %v740_v62, 0.0  ;;  %2016 = vmatpush3.bf16.msra.mxu1 %v2253_v42 }
 0x196   : > { %v743_v1 = vpop.f32.mrf.mxu0  ;;  %1014 = vmatmul.mubr.bf16.gmra.mxu1 %v806_v60  ;;  %2017 = vmatprep.subr.bf16.mxu1 %v2254_v43 }
 0x197   : > { %v744_v2 = vadd.f32 %v743_v1, %v2791_v50  ;;  %v788_v3 = vmax.f32 %v742_v63, 0.0 }
 0x198   : > { %v747_v4 = vpop.f32.mrf.mxu0 }
 0x199   : > { %v789_v6 = vmax.f32 %v744_v2, 0.0  ;;  %v808_v10 = vpack.c.bf16 %v788_v3, %v786_v7  ;;  %v748_v14 = vadd.f32 %v747_v4, %v2793_v51  ;;  %2018 = vmatpush3.bf16.msra.mxu1 %v2254_v43 }
 0x19a   : > { %v749_v8 = vpop.f32.mrf.mxu0  ;;  %2019 = vmatprep.subr.bf16.mxu1 %v2255_v44 }
 0x19b   : > { %v809_v9 = vpack.c.bf16 %v789_v6, %v787_v5  ;;  %v750_v12 = vadd.f32 %v749_v8, %v2791_v50  ;;  %v790_v21 = vmax.f32 %v748_v14, 0.0 }
 0x19c   : > { %v751_v11 = vpop.f32.mrf.mxu0 }
 0x19d   : > { %v752_v13 = vadd.f32 %v751_v11, %v2793_v51  ;;  %1021 = vmatprep.mubr.bf16.mxu1 %v809_v9  ;;  %v791_v19 = vmax.f32 %v750_v12, 0.0  ;;  %2020 = vmatpush3.bf16.msra.mxu1 %v2255_v44 }
 0x19e   : > { %v753_v15 = vpop.f32.mrf.mxu0  ;;  %1022 = vmatmul.mubr.bf16.gmra.mxu1 %v808_v10 }
 0x19f   : > { %v754_v16 = vadd.f32 %v753_v15, %v2791_v50  ;;  %v792_v17 = vmax.f32 %v752_v13, 0.0 }
 0x1a0   : > { %v757_v18 = vpop.f32.mrf.mxu0 }
 0x1a1   : > { %v793_v20 = vmax.f32 %v754_v16, 0.0  ;;  %v810_v24 = vpack.c.bf16 %v792_v17, %v790_v21  ;;  %v758_v28 = vadd.f32 %v757_v18, %v2793_v51 }
 0x1a2   : > { %v759_v22 = vpop.f32.mrf.mxu0 }
 0x1a3   : > { %v811_v23 = vpack.c.bf16 %v793_v20, %v791_v19  ;;  %v760_v26 = vadd.f32 %v759_v22, %v2791_v50  ;;  %v794_v34 = vmax.f32 %v758_v28, 0.0 }
 0x1a4   : > { %v761_v25 = vpop.f32.mrf.mxu0 }
 0x1a5   : > { %v762_v27 = vadd.f32 %v761_v25, %v2793_v51  ;;  %1029 = vmatprep.mubr.bf16.mxu1 %v811_v23  ;;  %v795_v32 = vmax.f32 %v760_v26, 0.0  ;;  %v2249_v51 = vld [vmem:[#allocation8 + $0x8] sm:$0xff]  }
 0x1a6   : > { %v763_v29 = vpop.f32.mrf.mxu0  ;;  %1030 = vmatmul.mubr.bf16.gmra.mxu1 %v810_v24  ;;  %1991 = vmatprep.subr.bf16.mxu0 %v2249_v51 }
 0x1a7   : > { %v764_v30 = vadd.f32 %v763_v29, %v2791_v50  ;;  %v796_v31 = vmax.f32 %v762_v27, 0.0  ;;  %1992 = vmatpush3.bf16.msra.mxu0 %v2249_v51  ;;  %v2250_v50 = vld [vmem:[#allocation8] sm:$0xff]  }
 0x1a8   : > { %1993 = vmatprep.subr.bf16.mxu0 %v2250_v50 }
 0x1a9   : > { %v797_v33 = vmax.f32 %v764_v30, 0.0  ;;  %v812_v36 = vpack.c.bf16 %v796_v31, %v794_v34 }
 0x1ab   : > { %v813_v35 = vpack.c.bf16 %v797_v33, %v795_v32  ;;  %1994 = vmatpush3.bf16.msra.mxu0 %v2250_v50 }
 0x1ad   : > { %1037 = vmatprep.mubr.bf16.mxu1 %v813_v35 }
 0x1ae   : > { %1038 = vmatmul.mubr.bf16.gmra.mxu1 %v812_v36 }
 0x236   : > { %v1883_v45 = vpop.f32.mrf.mxu1 }
 0x238   : > { %v1884_v46 = vpop.f32.mrf.mxu1 }
 0x239   : > { %v1885_v47 = vadd.f32 %v1884_v46, %v1883_v45 }
 0x23a   : > { %v1886_v49 = vpop.f32.mrf.mxu1 }
 0x23b   : > { %v984_v53 = vadd.f32 %v1885_v47, %v2830_v48 }
 0x23c   : > { %v1887_v52 = vpop.f32.mrf.mxu1 }
 0x23d   : > { %v1888_v54 = vadd.f32 %v1887_v52, %v1886_v49  ;;  %v1046_v58 = vmax.f32 %v984_v53, 0.0 }
 0x23e   : > { %v1889_v55 = vpop.f32.mrf.mxu1 }
 0x23f   : > { %v987_v56 = vadd.f32 %v1888_v54, %v2830_v48 }
 0x240   : > { %v1890_v57 = vpop.f32.mrf.mxu1 }
 0x241   : > { %v1047_v59 = vmax.f32 %v987_v56, 0.0  ;;  %v1891_v60 = vadd.f32 %v1890_v57, %v1889_v55 }
 0x242   : > { %v1892_v61 = vpop.f32.mrf.mxu1 }
 0x243   : > { %v1062_v62 = vpack.c.bf16 %v1047_v59, %v1046_v58  ;;  %v992_v0 = vadd.f32 %v1891_v60, %v2830_v48 }
 0x244   : > { %v1893_v63 = vpop.f32.mrf.mxu1 }
 0x245   : > { %v1894_v1 = vadd.f32 %v1893_v63, %v1892_v61  ;;  %1995 = vmatprep.mubr.bf16.mxu0 %v1062_v62  ;;  %v1048_v5 = vmax.f32 %v992_v0, 0.0 }
 0x246   : > { %v1895_v2 = vpop.f32.mrf.mxu1 }
 0x247   : > { %v995_v3 = vadd.f32 %v1894_v1, %v2830_v48 }
 0x248   : > { %v1896_v4 = vpop.f32.mrf.mxu1 }
 0x249   : > { %v1049_v6 = vmax.f32 %v995_v3, 0.0  ;;  %v1897_v7 = vadd.f32 %v1896_v4, %v1895_v2 }
 0x24a   : > { %v1898_v8 = vpop.f32.mrf.mxu1 }
 0x24b   : > { %v1063_v9 = vpack.c.bf16 %v1049_v6, %v1048_v5  ;;  %v1000_v11 = vadd.f32 %v1897_v7, %v2830_v48 }
 0x24c   : > { %v1899_v10 = vpop.f32.mrf.mxu1 }
 0x24d   : > { %v1900_v12 = vadd.f32 %v1899_v10, %v1898_v8  ;;  %1996 = vmatmul.mubr.bf16.vlgmr.msra.gmra.mxu0 %v1063_v9  ;;  %v1050_v16 = vmax.f32 %v1000_v11, 0.0  ;;  %v2256_v9 = vld [vmem:[#allocation10 + $0x10] sm:$0xff]   ;;  %v2257_v10 = vld [vmem:[#allocation10 + $0x8] sm:$0xff]   ;;  %v2258_v11 = vld [vmem:[#allocation10] sm:$0xff]  }
 0x24e   : > { %v1901_v13 = vpop.f32.mrf.mxu1  ;;  %2021 = vmatprep.subr.bf16.mxu1 %v2256_v9 }
 0x24f   : > { %v1003_v14 = vadd.f32 %v1900_v12, %v2830_v48  ;;  %2022 = vmatpush3.bf16.msra.mxu1 %v2256_v9  ;;  %v2259_v12 = vld [vmem:[#allocation11 + $0x38] sm:$0xff]  }
 0x250   : > { %v1902_v15 = vpop.f32.mrf.mxu1  ;;  %2023 = vmatprep.subr.bf16.mxu1 %v2257_v10  ;;  %2043 = vmatprep.subr.bf16.mxu0 %v2259_v12 }
 0x251   : > { %v1051_v17 = vmax.f32 %v1003_v14, 0.0  ;;  %v1903_v18 = vadd.f32 %v1902_v15, %v1901_v13  ;;  %v2260_v13 = vld [vmem:[#allocation11 + $0x30] sm:$0xff]   ;;  %2044 = vmatpush3.bf16.msra.mxu0 %v2259_v12  ;;  %v2262_v14 = vld [vmem:[#allocation11 + $0x20] sm:$0xff]   ;;  %v2263_v15 = vld [vmem:[#allocation11 + $0x18] sm:$0xff]  }
 0x252   : > { %v1904_v19 = vpop.f32.mrf.mxu1  ;;  %2045 = vmatprep.subr.bf16.mxu0 %v2260_v13 }
 0x253   : > { %v1064_v20 = vpack.c.bf16 %v1051_v17, %v1050_v16  ;;  %v1008_v22 = vadd.f32 %v1903_v18, %v2830_v48  ;;  %2024 = vmatpush3.bf16.msra.mxu1 %v2257_v10  ;;  %v2851_v18 = vld [vmem:[%s2950_s6] ss:$0 sm:$0xff]  ;;  %v2264_v10 = vld [vmem:[#allocation11 + $0x10] sm:$0xff]  }
 0x254   : > { %v1905_v21 = vpop.f32.mrf.mxu1  ;;  %2025 = vmatprep.subr.bf16.mxu1 %v2258_v11 }
 0x255   : > { %v1906_v23 = vadd.f32 %v1905_v21, %v1904_v19  ;;  %1999 = vmatprep.mubr.bf16.mxu0 %v1064_v20  ;;  %v1052_v27 = vmax.f32 %v1008_v22, 0.0  ;;  %2046 = vmatpush3.bf16.msra.mxu0 %v2260_v13 }
 0x256   : > { %v1907_v24 = vpop.f32.mrf.mxu1 }
 0x257   : > { %v1011_v25 = vadd.f32 %v1906_v23, %v2830_v48  ;;  %2026 = vmatpush3.bf16.msra.mxu1 %v2258_v11  ;;  %v2265_v11 = vld [vmem:[#allocation11 + $0x8] sm:$0xff]  }
 0x258   : > { %v1908_v26 = vpop.f32.mrf.mxu1  ;;  %2075 = vmatprep.subr.bf16.mxu1 %v2259_v12 }
 0x259   : > { %v1053_v28 = vmax.f32 %v1011_v25, 0.0  ;;  %v1909_v29 = vadd.f32 %v1908_v26, %v1907_v24 }
 0x25a   : > { %v1910_v30 = vpop.f32.mrf.mxu1 }
 0x25b   : > { %v1065_v31 = vpack.c.bf16 %v1053_v28, %v1052_v27  ;;  %v1016_v33 = vadd.f32 %v1909_v29, %v2830_v48 }
 0x25c   : > { %v1911_v32 = vpop.f32.mrf.mxu1 }
 0x25d   : > { %v1912_v34 = vadd.f32 %v1911_v32, %v1910_v30  ;;  %2000 = vmatmul.mubr.bf16.gmra.mxu0 %v1065_v31  ;;  %v1054_v38 = vmax.f32 %v1016_v33, 0.0 }
 0x25e   : > { %v1913_v35 = vpop.f32.mrf.mxu1 }
 0x25f   : > { %v1019_v36 = vadd.f32 %v1912_v34, %v2830_v48 }
 0x260   : > { %v1914_v37 = vpop.f32.mrf.mxu1 }
 0x261   : > { %v1055_v39 = vmax.f32 %v1019_v36, 0.0  ;;  %v1915_v51 = vadd.f32 %v1914_v37, %v1913_v35 }
 0x262   : > { %v1916_v50 = vpop.f32.mrf.mxu1 }
 0x263   : > { %v1066_v40 = vpack.c.bf16 %v1055_v39, %v1054_v38  ;;  %v1024_v42 = vadd.f32 %v1915_v51, %v2830_v48 }
 0x264   : > { %v1917_v41 = vpop.f32.mrf.mxu1 }
 0x265   : > { %v1918_v43 = vadd.f32 %v1917_v41, %v1916_v50  ;;  %2003 = vmatprep.mubr.bf16.mxu0 %v1066_v40  ;;  %v1056_v47 = vmax.f32 %v1024_v42, 0.0 }
 0x266   : > { %v1919_v44 = vpop.f32.mrf.mxu1 }
 0x267   : > { %v1027_v45 = vadd.f32 %v1918_v43, %v2830_v48 }
 0x268   : > { %v1920_v46 = vpop.f32.mrf.mxu1 }
 0x269   : > { %v1057_v49 = vmax.f32 %v1027_v45, 0.0  ;;  %v1921_v52 = vadd.f32 %v1920_v46, %v1919_v44 }
 0x26a   : > { %v1922_v53 = vpop.f32.mrf.mxu1 }
 0x26b   : > { %v1067_v54 = vpack.c.bf16 %v1057_v49, %v1056_v47  ;;  %v1032_v56 = vadd.f32 %v1921_v52, %v2830_v48 }
 0x26c   : > { %v1923_v55 = vpop.f32.mrf.mxu1 }
 0x26d   : > { %v1924_v57 = vadd.f32 %v1923_v55, %v1922_v53  ;;  %2004 = vmatmul.mubr.bf16.gmra.mxu0 %v1067_v54  ;;  %v1058_v61 = vmax.f32 %v1032_v56, 0.0 }
 0x26e   : > { %v1925_v58 = vpop.f32.mrf.mxu1 }
 0x26f   : > { %v1035_v59 = vadd.f32 %v1924_v57, %v2830_v48 }
 0x270   : > { %v1926_v60 = vpop.f32.mrf.mxu1 }
 0x271   : > { %v1059_v62 = vmax.f32 %v1035_v59, 0.0  ;;  %v1927_v63 = vadd.f32 %v1926_v60, %v1925_v58 }
 0x272   : > { %v1928_v0 = vpop.f32.mrf.mxu1 }
 0x273   : > { %v1068_v1 = vpack.c.bf16 %v1059_v62, %v1058_v61  ;;  %v1040_v3 = vadd.f32 %v1927_v63, %v2830_v48 }
 0x274   : > { %v1929_v2 = vpop.f32.mrf.mxu1 }
 0x275   : > { %v1930_v4 = vadd.f32 %v1929_v2, %v1928_v0  ;;  %2007 = vmatprep.mubr.bf16.mxu0 %v1068_v1  ;;  %v1060_v6 = vmax.f32 %v1040_v3, 0.0 }
 0x277   : > { %v1043_v5 = vadd.f32 %v1930_v4, %v2830_v48  ;;  %v2261_v48 = vld [vmem:[#allocation11 + $0x28] sm:$0xff]  }
 0x278   : > { %2047 = vmatprep.subr.bf16.mxu0 %v2261_v48 }
 0x279   : > { %v1061_v7 = vmax.f32 %v1043_v5, 0.0  ;;  %2048 = vmatpush3.bf16.msra.mxu0 %v2261_v48 }
 0x27a   : > { %2049 = vmatprep.subr.bf16.mxu0 %v2262_v14 }
 0x27b   : > { %v1069_v8 = vpack.c.bf16 %v1061_v7, %v1060_v6 }
 0x27d   : > { %2008 = vmatmul.mubr.bf16.gmra.mxu0 %v1069_v8 }
 0x27e   : > { %2050 = vmatpush3.bf16.msra.mxu0 %v2262_v14 }
 0x27f   : > { %2051 = vmatprep.subr.bf16.mxu0 %v2263_v15 }
 0x282   : > { %2052 = vmatpush3.bf16.msra.mxu0 %v2263_v15 }
 0x283   : > { %2053 = vmatprep.subr.bf16.mxu0 %v2264_v10 }
 0x286   : > { %2054 = vmatpush3.bf16.msra.mxu0 %v2264_v10 }
 0x287   : > { %2055 = vmatprep.subr.bf16.mxu0 %v2265_v11 }
 0x28a   : > { %2056 = vmatpush3.bf16.msra.mxu0 %v2265_v11 }
 0x30d   : > { %v1997_v16 = vpop.f32.mrf.mxu0 }
 0x30e   : > { %v1184_v22 = vadd.f32 %v1997_v16, %v2851_v18 }
 0x30f   : > { %v1175_v17 = vpop.f32.mrf.mxu0 }
 0x310   : > { %v1176_v20 = vadd.f32 %v2851_v18, %v1175_v17  ;;  %v1240_v28 = vmax.f32 %v1184_v22, 0.0 }
 0x311   : > { %v1998_v19 = vpop.f32.mrf.mxu0 }
 0x312   : > { %v1187_v21 = vadd.f32 %v1998_v19, %v2851_v18  ;;  %v1238_v26 = vmax.f32 %v1176_v20, 0.0 }
 0x313   : > { %v1178_v23 = vpop.f32.mrf.mxu0 }
 0x314   : > { %v1179_v24 = vadd.f32 %v2851_v18, %v1178_v23  ;;  %v1241_v25 = vmax.f32 %v1187_v21, 0.0 }
 0x316   : > { %v1239_v27 = vmax.f32 %v1179_v24, 0.0  ;;  %v1255_v30 = vpack.c.bf16 %v1241_v25, %v1240_v28 }
 0x318   : > { %v1254_v29 = vpack.c.bf16 %v1239_v27, %v1238_v26 }
 0x31a   : > { %2027 = vmatprep.mubr.bf16.mxu1 %v1254_v29 }
 0x31b   : > { %2028 = vmatmul.mubr.bf16.vlgmr.msra.gmra.mxu1 %v1255_v30 }
 0x31c   : > { %2083 = vmatpush3.bf16.msra.mxu1 %v2259_v12  ;;  %v2266_v12 = vld [vmem:[#allocation11] sm:$0xff]  }
 0x31d   : > { %v2001_v31 = vpop.f32.mrf.mxu0  ;;  %2076 = vmatprep.subr.bf16.mxu1 %v2260_v13  ;;  %2057 = vmatprep.subr.bf16.mxu0 %v2266_v12 }
 0x31e   : > { %v1200_v36 = vadd.f32 %v2001_v31, %v2851_v18  ;;  %2058 = vmatpush3.bf16.msra.mxu0 %v2266_v12 }
 0x31f   : > { %v1191_v32 = vpop.f32.mrf.mxu0 }
 0x320   : > { %2084 = vmatpush3.bf16.msra.mxu1 %v2260_v13  ;;  %v1192_v34 = vadd.f32 %v2851_v18, %v1191_v32  ;;  %v1244_v40 = vmax.f32 %v1200_v36, 0.0 }
 0x321   : > { %v2002_v33 = vpop.f32.mrf.mxu0  ;;  %2077 = vmatprep.subr.bf16.mxu1 %v2261_v48 }
 0x322   : > { %v1203_v35 = vadd.f32 %v2002_v33, %v2851_v18  ;;  %v1242_v51 = vmax.f32 %v1192_v34, 0.0 }
 0x323   : > { %v1194_v37 = vpop.f32.mrf.mxu0 }
 0x324   : > { %v1195_v38 = vadd.f32 %v2851_v18, %v1194_v37  ;;  %2085 = vmatpush3.bf16.msra.mxu1 %v2261_v48  ;;  %v1245_v39 = vmax.f32 %v1203_v35, 0.0 }
 0x325   : > { %2078 = vmatprep.subr.bf16.mxu1 %v2262_v14 }
 0x326   : > { %v1243_v50 = vmax.f32 %v1195_v38, 0.0  ;;  %v1257_v42 = vpack.c.bf16 %v1245_v39, %v1244_v40 }
 0x328   : > { %v1256_v41 = vpack.c.bf16 %v1243_v50, %v1242_v51  ;;  %2086 = vmatpush3.bf16.msra.mxu1 %v2262_v14  ;;  %v1842_v14 = vld [vmem:[%s2952_s8] ss:$0 sm:$0xff] }
 0x329   : > { %2079 = vmatprep.subr.bf16.mxu1 %v2263_v15 }
 0x32a   : > { %2031 = vmatprep.mubr.bf16.mxu1 %v1256_v41 }
 0x32b   : > { %2032 = vmatmul.mubr.bf16.gmra.mxu1 %v1257_v42 }
 0x32c   : > { %2087 = vmatpush3.bf16.msra.mxu1 %v2263_v15 }
 0x32d   : > { %v2005_v43 = vpop.f32.mrf.mxu0  ;;  %2080 = vmatprep.subr.bf16.mxu1 %v2264_v10 }
 0x32e   : > { %v1216_v49 = vadd.f32 %v2005_v43, %v2851_v18 }
 0x32f   : > { %v1207_v44 = vpop.f32.mrf.mxu0 }
 0x330   : > { %v1208_v46 = vadd.f32 %v2851_v18, %v1207_v44  ;;  %v1248_v57 = vmax.f32 %v1216_v49, 0.0  ;;  %2088 = vmatpush3.bf16.msra.mxu1 %v2264_v10 }
 0x331   : > { %v2006_v45 = vpop.f32.mrf.mxu0  ;;  %2081 = vmatprep.subr.bf16.mxu1 %v2265_v11 }
 0x332   : > { %v1219_v47 = vadd.f32 %v2006_v45, %v2851_v18  ;;  %v1246_v55 = vmax.f32 %v1208_v46, 0.0 }
 0x333   : > { %v1210_v52 = vpop.f32.mrf.mxu0 }
 0x334   : > { %v1211_v53 = vadd.f32 %v2851_v18, %v1210_v52  ;;  %v1249_v54 = vmax.f32 %v1219_v47, 0.0  ;;  %2089 = vmatpush3.bf16.msra.mxu1 %v2265_v11 }
 0x335   : > { %2082 = vmatprep.subr.bf16.mxu1 %v2266_v12 }
 0x336   : > { %v1247_v56 = vmax.f32 %v1211_v53, 0.0  ;;  %v1259_v59 = vpack.c.bf16 %v1249_v54, %v1248_v57 }
 0x338   : > { %v1258_v58 = vpack.c.bf16 %v1247_v56, %v1246_v55  ;;  %2090 = vmatpush3.bf16.msra.mxu1 %v2266_v12 }
 0x33a   : > { %2035 = vmatprep.mubr.bf16.mxu1 %v1258_v58 }
 0x33b   : > { %2036 = vmatmul.mubr.bf16.gmra.mxu1 %v1259_v59 }
 0x33d   : > { %v2009_v60 = vpop.f32.mrf.mxu0 }
 0x33e   : > { %v1232_v1 = vadd.f32 %v2009_v60, %v2851_v18 }
 0x33f   : > { %v1223_v61 = vpop.f32.mrf.mxu0 }
 0x340   : > { %v1224_v63 = vadd.f32 %v2851_v18, %v1223_v61  ;;  %v1252_v7 = vmax.f32 %v1232_v1, 0.0 }
 0x341   : > { %v2010_v62 = vpop.f32.mrf.mxu0 }
 0x342   : > { %v1235_v0 = vadd.f32 %v2010_v62, %v2851_v18  ;;  %v1250_v5 = vmax.f32 %v1224_v63, 0.0 }
 0x343   : > { %v1226_v2 = vpop.f32.mrf.mxu0 }
 0x344   : > { %v1227_v3 = vadd.f32 %v2851_v18, %v1226_v2  ;;  %v1253_v4 = vmax.f32 %v1235_v0, 0.0 }
 0x346   : > { %v1251_v6 = vmax.f32 %v1227_v3, 0.0  ;;  %v1261_v9 = vpack.c.bf16 %v1253_v4, %v1252_v7 }
 0x348   : > { %v1260_v8 = vpack.c.bf16 %v1251_v6, %v1250_v5  ;;  %v1851_v6 = vld [vmem:[%s2954_s10] ss:$0 sm:$0xff] }
 0x34a   : > { %2039 = vmatprep.mubr.bf16.mxu1 %v1260_v8 }
 0x34b   : > { %2040 = vmatmul.mubr.bf16.gmra.mxu1 %v1261_v9 }
 0x3db   : > { %v2029_v13 = vpop.f32.mrf.mxu1 }
 0x3dc   : > { %v1376_v18 = vadd.f32 %v2029_v13, %v1842_v14 }
 0x3dd   : > { %v1367_v48 = vpop.f32.mrf.mxu1 }
 0x3de   : > { %v1368_v16 = vadd.f32 %v1842_v14, %v1367_v48  ;;  %v1432_v24 = vmax.f32 %v1376_v18, 0.0 }
 0x3df   : > { %v2030_v15 = vpop.f32.mrf.mxu1 }
 0x3e0   : > { %v1379_v17 = vadd.f32 %v2030_v15, %v1842_v14  ;;  %v1430_v22 = vmax.f32 %v1368_v16, 0.0 }
 0x3e1   : > { %v1370_v19 = vpop.f32.mrf.mxu1 }
 0x3e2   : > { %v1371_v20 = vadd.f32 %v1842_v14, %v1370_v19  ;;  %v1433_v21 = vmax.f32 %v1379_v17, 0.0 }
 0x3e4   : > { %v1431_v23 = vmax.f32 %v1371_v20, 0.0  ;;  %v1447_v26 = vpack.c.bf16 %v1433_v21, %v1432_v24 }
 0x3e6   : > { %v1446_v25 = vpack.c.bf16 %v1431_v23, %v1430_v22 }
 0x3e8   : > { %2059 = vmatprep.mubr.bf16.mxu0 %v1446_v25 }
 0x3e9   : > { %2060 = vmatmul.mubr.bf16.vlgmr.msra.gmra.mxu0 %v1447_v26 }
 0x3eb   : > { %v2033_v27 = vpop.f32.mrf.mxu1 }
 0x3ec   : > { %v1392_v32 = vadd.f32 %v2033_v27, %v1842_v14 }
 0x3ed   : > { %v1383_v28 = vpop.f32.mrf.mxu1 }
 0x3ee   : > { %v1384_v30 = vadd.f32 %v1842_v14, %v1383_v28  ;;  %v1436_v38 = vmax.f32 %v1392_v32, 0.0 }
 0x3ef   : > { %v2034_v29 = vpop.f32.mrf.mxu1 }
 0x3f0   : > { %v1395_v31 = vadd.f32 %v2034_v29, %v1842_v14  ;;  %v1434_v36 = vmax.f32 %v1384_v30, 0.0 }
 0x3f1   : > { %v1386_v33 = vpop.f32.mrf.mxu1 }
 0x3f2   : > { %v1387_v34 = vadd.f32 %v1842_v14, %v1386_v33  ;;  %v1437_v35 = vmax.f32 %v1395_v31, 0.0 }
 0x3f4   : > { %v1435_v37 = vmax.f32 %v1387_v34, 0.0  ;;  %v1449_v51 = vpack.c.bf16 %v1437_v35, %v1436_v38 }
 0x3f6   : > { %v1448_v39 = vpack.c.bf16 %v1435_v37, %v1434_v36 }
 0x3f8   : > { %2063 = vmatprep.mubr.bf16.mxu0 %v1448_v39 }
 0x3f9   : > { %2064 = vmatmul.mubr.bf16.gmra.mxu0 %v1449_v51 }
 0x3fb   : > { %v2037_v50 = vpop.f32.mrf.mxu1 }
 0x3fc   : > { %v1408_v44 = vadd.f32 %v2037_v50, %v1842_v14 }
 0x3fd   : > { %v1399_v40 = vpop.f32.mrf.mxu1 }
 0x3fe   : > { %v1400_v42 = vadd.f32 %v1842_v14, %v1399_v40  ;;  %v1440_v53 = vmax.f32 %v1408_v44, 0.0 }
 0x3ff   : > { %v2038_v41 = vpop.f32.mrf.mxu1 }
 0x400   : > { %v1411_v43 = vadd.f32 %v2038_v41, %v1842_v14  ;;  %v1438_v49 = vmax.f32 %v1400_v42, 0.0 }
 0x401   : > { %v1402_v45 = vpop.f32.mrf.mxu1 }
 0x402   : > { %v1403_v46 = vadd.f32 %v1842_v14, %v1402_v45  ;;  %v1441_v47 = vmax.f32 %v1411_v43, 0.0 }
 0x404   : > { %v1439_v52 = vmax.f32 %v1403_v46, 0.0  ;;  %v1451_v55 = vpack.c.bf16 %v1441_v47, %v1440_v53 }
 0x406   : > { %v1450_v54 = vpack.c.bf16 %v1439_v52, %v1438_v49 }
 0x408   : > { %2067 = vmatprep.mubr.bf16.mxu1 %v1450_v54 }
 0x409   : > { %2068 = vmatmul.mubr.bf16.vlgmr.msra.gmra.mxu1 %v1451_v55 }
 0x40b   : > { %v2041_v56 = vpop.f32.mrf.mxu1 }
 0x40c   : > { %v1424_v61 = vadd.f32 %v2041_v56, %v1842_v14 }
 0x40d   : > { %v1415_v57 = vpop.f32.mrf.mxu1 }
 0x40e   : > { %v1416_v59 = vadd.f32 %v1842_v14, %v1415_v57  ;;  %v1444_v3 = vmax.f32 %v1424_v61, 0.0 }
 0x40f   : > { %v2042_v58 = vpop.f32.mrf.mxu1 }
 0x410   : > { %v1427_v60 = vadd.f32 %v2042_v58, %v1842_v14  ;;  %v1442_v1 = vmax.f32 %v1416_v59, 0.0 }
 0x411   : > { %v1418_v62 = vpop.f32.mrf.mxu1 }
 0x412   : > { %v1419_v63 = vadd.f32 %v1842_v14, %v1418_v62  ;;  %v1445_v0 = vmax.f32 %v1427_v60, 0.0 }
 0x414   : > { %v1443_v2 = vmax.f32 %v1419_v63, 0.0  ;;  %v1453_v5 = vpack.c.bf16 %v1445_v0, %v1444_v3 }
 0x416   : > { %v1452_v4 = vpack.c.bf16 %v1443_v2, %v1442_v1 }
 0x418   : > { %2071 = vmatprep.mubr.bf16.mxu1 %v1452_v4 }
 0x419   : > { %2072 = vmatmul.mubr.bf16.gmra.mxu1 %v1453_v5 }
 0x4a9   : > { %v2061_v7 = vpop.f32.mrf.mxu0 }
 0x4aa   : > { %v1568_v8 = vadd.f32 %v2061_v7, %v1851_v6 }
 0x4ab   : > { %v1559_v9 = vpop.f32.mrf.mxu0 }
 0x4ac   : > { %1624 = vst [vmem:[%s2876_s9 + $0x10] sm:$0xff] %v1568_v8  ;;  %v1560_v10 = vadd.f32 %v1851_v6, %v1559_v9 }
 0x4ad   : > { %v2062_v11 = vpop.f32.mrf.mxu0 }
 0x4ae   : > { %1622 = vst [vmem:[%s2876_s9] sm:$0xff] %v1560_v10  ;;  %v1571_v12 = vadd.f32 %v2062_v11, %v1851_v6 }
 0x4af   : > { %v1562_v13 = vpop.f32.mrf.mxu0 }
 0x4b0   : > { %1625 = vst [vmem:[%s2876_s9 + $0x18] sm:$0xff] %v1571_v12  ;;  %v1563_v48 = vadd.f32 %v1851_v6, %v1562_v13 }
 0x4b2   : > { %1623 = vst [vmem:[%s2876_s9 + $0x8] sm:$0xff] %v1563_v48 }
 0x4b9   : > { %v2065_v14 = vpop.f32.mrf.mxu0 }
 0x4ba   : > { %v1584_v15 = vadd.f32 %v2065_v14, %v1851_v6 }
 0x4bb   : > { %v1575_v16 = vpop.f32.mrf.mxu0 }
 0x4bc   : > { %1628 = vst [vmem:[%s2876_s9 + $0x30] sm:$0xff] %v1584_v15  ;;  %v1576_v17 = vadd.f32 %v1851_v6, %v1575_v16 }
 0x4bd   : > { %v2066_v18 = vpop.f32.mrf.mxu0 }
 0x4be   : > { %1626 = vst [vmem:[%s2876_s9 + $0x20] sm:$0xff] %v1576_v17  ;;  %v1587_v19 = vadd.f32 %v2066_v18, %v1851_v6 }
 0x4bf   : > { %v1578_v20 = vpop.f32.mrf.mxu0 }
 0x4c0   : > { %1629 = vst [vmem:[%s2876_s9 + $0x38] sm:$0xff] %v1587_v19  ;;  %v1579_v21 = vadd.f32 %v1851_v6, %v1578_v20 }
 0x4c2   : > { %1627 = vst [vmem:[%s2876_s9 + $0x28] sm:$0xff] %v1579_v21 }
 0x4c9   : > { %v2069_v22 = vpop.f32.mrf.mxu1 }
 0x4ca   : > { %v1600_v23 = vadd.f32 %v2069_v22, %v1851_v6 }
 0x4cb   : > { %v1591_v24 = vpop.f32.mrf.mxu1 }
 0x4cc   : > { %1632 = vst [vmem:[%s2876_s9 + $0x50] sm:$0xff] %v1600_v23  ;;  %v1592_v25 = vadd.f32 %v1851_v6, %v1591_v24 }
 0x4cd   : > { %v2070_v26 = vpop.f32.mrf.mxu1 }
 0x4ce   : > { %1630 = vst [vmem:[%s2876_s9 + $0x40] sm:$0xff] %v1592_v25  ;;  %v1603_v27 = vadd.f32 %v2070_v26, %v1851_v6 }
 0x4cf   : > { %v1594_v28 = vpop.f32.mrf.mxu1 }
 0x4d0   : > { %1633 = vst [vmem:[%s2876_s9 + $0x58] sm:$0xff] %v1603_v27  ;;  %v1595_v29 = vadd.f32 %v1851_v6, %v1594_v28 }
 0x4d2   : > { %1631 = vst [vmem:[%s2876_s9 + $0x48] sm:$0xff] %v1595_v29 }
 0x4d9   : > { %v2073_v30 = vpop.f32.mrf.mxu1 }
 0x4da   : > { %v1616_v31 = vadd.f32 %v2073_v30, %v1851_v6 }
 0x4db   : > { %v1607_v32 = vpop.f32.mrf.mxu1 }
 0x4dc   : > { %1636 = vst [vmem:[%s2876_s9 + $0x70] sm:$0xff] %v1616_v31  ;;  %v1608_v33 = vadd.f32 %v1851_v6, %v1607_v32 }
 0x4dd   : > { %v2074_v34 = vpop.f32.mrf.mxu1 }
 0x4de   : > { %1634 = vst [vmem:[%s2876_s9 + $0x60] sm:$0xff] %v1608_v33  ;;  %v1619_v35 = vadd.f32 %v2074_v34, %v1851_v6 }
 0x4df   : > { %v1610_v36 = vpop.f32.mrf.mxu1 }
 0x4e0   : > { %1637 = vst [vmem:[%s2876_s9 + $0x78] sm:$0xff] %v1619_v35  ;;  %v1611_v37 = vadd.f32 %v1851_v6, %v1610_v36 }
 0x4e2   : > { %1635 = vst [vmem:[%s2876_s9 + $0x68] sm:$0xff] %v1611_v37 }
 0x4e3   : > { %2438 = shalt.err (!%p2435_p3)
}
 0x4e4   : > { %s2439_s13 = scalar_lea.hbm %s2897_s24, 2048  ;;  %s2443_s16 = scalar_lea.hbm %s2955_s11, 4096 }
 0x4e5   : > { %p2440_p4 = scmp.ne.s32.totalorder %s2897_s24, %s2439_s13  ;;  %p2444_p2 = scmp.lt.s32.totalorder %s2897_s24, %s2955_s11 }
 0x4e6   : > { %p2445_p7 = scmp.lt.s32.totalorder %s2443_s16, %s2439_s13 }
 0x4e7   : > { %p2441_p12 = pnand %p2440_p4, %p2989_p11 }
 0x4e8   : > { %p2446_p8 = por %p2445_p7, %p2444_p2 }
 0x4e9   : > { %p2442_p6 = pneg %p2441_p12 }
 0x4eb   : > { %p2447_p10 = pnand %p2446_p8, %p2442_p6 }
 0x4ed   : > { %2450 = shalt.err (!%p2447_p10)
}
 0x4ee   : > { %s2515_s1 = smov 128   ;;  %s2516_s3 = smov 8  }
 0x4ef   : > { %2113 = dma.vmem_to_hbm [thread:$0]  (%p2989_p11), %s2899_s28, 2048, %s2897_s24, %s1639_s26, %s2515_s1, %s2515_s1, %s2516_s3  }
 0x4f0 PF: > { %s1667_s23 = sand.u32 1, %s2489_s17   ;;  %p2990_p0 = scmp.ne.s32.totalorder %s2977_s14, 0 }
 0x4f1   : > { %p2991_p13 = scmp.ge.s32.totalorder %s2501_s20, 2  ;;  %s1668_s29 = scalar_lea.sflag [#allocation4], %s1667_s23 }
 0x4f3   : > { %p2136_p5 = pnand %p2991_p13, %p2990_p0 }
 0x4f5   : > { %p2137_p9 = pneg %p2136_p5 }
 0x4f7   : > { %2484 = dma.done.wait (%p2137_p9), %s1668_s29, 2048  }
 0x4f8   : > { %2486 = vsyncadd (%p2137_p9), %s1668_s29, 4294965248  ;;  %p27_p1 = scmp.ge.s32.totalorder %s2681_s30, 4   ;;  %s2992_s17 = smov %s2493_s18 }
 0x4f9   : > { %s2993_s18 = smov %s2497_s19  ;;  %s2994_s19 = smov %s2693_s12 }
 0x4fa   : > { %s2995_s20 = smov %s2681_s30  ;;  %29 = sbr.rel (!%p27_p1) target bundleno = 14 (0xe), region = 129 }
 0x4ff   :  { %1673 = vsyncpa [#allocation3], 1 }
 0x500   :  { %1675 = vsyncpa [#allocation3 + $0x1], 1 }
 0x501   :  { %1676 = vsyncpa [#allocation6], 1 }
 0x502   :  { %1677 = vsyncpa [#allocation9], 1 }
 0x503   :  { %1678 = vsyncpa [#allocation12], 1 }
 0x504   :  { %1679 = vsyncpa [#allocation4], 1 }
 0x505   :  { %1681 = vsyncpa [#allocation4 + $0x1], 1 }

</bundles_post_ra>
